<compile_context>
chip_gen: v5e
topology: v5e:2x2
jax: 0.10.0
libtpu: 0.0.40
codegen_flags: <defaults>
</compile_context>

<pallas_src>
import numpy as np
import jax
import jax.numpy as jnp
from jax.experimental import pallas as pl
from jax.experimental.pallas import tpu as pltpu


def _round_up(x, m):
    return ((x + m - 1) // m) * m


# --------------------------------------------------------------------------- #
# Kernel: one batch tile, full ensemble.
# --------------------------------------------------------------------------- #
def _disagreement_kernel(x_ref, nxt_ref, w1_ref, b1_ref, w2_ref, b2_ref, out_ref):
    n_models, hp, pp = w2_ref.shape            # static python ints
    tb = x_ref.shape[0]
    out_w = out_ref.shape[-1]

    # ---- Layer 1: single fused K = D_in matmul over all models ------------- #
    h = jnp.dot(x_ref[...], w1_ref[...], preferred_element_type=jnp.float32)
    h = jnp.maximum(h + b1_ref[...], 0.0)      # f32 (TB, M*Hp), bias/ReLU in f32
    h_mm = h.astype(w2_ref.dtype)              # bf16 cast only on the fast path

    nxt = nxt_ref[...].astype(jnp.float32)     # (TB, Pp), padded lanes are zero
    col = jax.lax.broadcasted_iota(jnp.int32, (tb, out_w), 1)
    acc = jnp.zeros((tb, out_w), jnp.float32)

    # ---- Layer 2 + L2 error: one per-model dot (no block-diagonal W2) ------ #
    for m in range(n_models):                  # static unroll, n_models is small
        hm = h_mm[:, m * hp:(m + 1) * hp]      # 128-aligned lane slice (no relayout)
        ym = jnp.dot(hm, w2_ref[m], preferred_element_type=jnp.float32) + b2_ref[m]
        d = nxt - ym                           # f32 epilogue (padded lanes -> 0)
        ssq = jnp.sum(d * d, axis=-1, keepdims=True)       # (TB, 1) lane reduce
        acc = acc + jnp.where(col == m, ssq, 0.0)           # scatter into lane m

    out_ref[...] = jnp.sqrt(acc).astype(out_ref.dtype)      # lane-dense store


# --------------------------------------------------------------------------- #
# Parameter init + one-time packing (hoisted off the per-step critical path).
# --------------------------------------------------------------------------- #
def init_params(key, obs_dim, action_dim, hidden_dim, n_models=5, pred_dim=None):
    """nn.Linear-style init: U[-1/sqrt(fan_in), 1/sqrt(fan_in)]."""
    if pred_dim is None:
        pred_dim = obs_dim
    d_in = obs_dim + action_dim
    k1, k2, k3, k4 = jax.random.split(key, 4)
    lim1 = 1.0 / jnp.sqrt(d_in)
    lim2 = 1.0 / jnp.sqrt(hidden_dim)
    w1 = jax.random.uniform(k1, (n_models, d_in, hidden_dim), jnp.float32, -lim1, lim1)
    b1 = jax.random.uniform(k2, (n_models, 1, hidden_dim), jnp.float32, -lim1, lim1)
    w2 = jax.random.uniform(k3, (n_models, hidden_dim, pred_dim), jnp.float32, -lim2, lim2)
    b2 = jax.random.uniform(k4, (n_models, 1, pred_dim), jnp.float32, -lim2, lim2)
    return w1, b1, w2, b2


def pack_params(params, obs_dim, action_dim, *, matmul_dtype=jnp.bfloat16,
                lane_multiple=128):
    """Pack once at init. lane_multiple=128 is safe everywhere (256 can help v6e/v7x)."""
    w1, b1, w2, b2 = params
    f32 = jnp.float32
    n_models, d_in, hidden = w1.shape
    pred = w2.shape[-1]
    assert d_in == obs_dim + action_dim
    hp = _round_up(hidden, lane_multiple)
    pp = _round_up(pred, lane_multiple)
    dp = _round_up(d_in, 8)                    # sublane-align the contraction dim

    # W1: (M, D_in, H) -> (Dp, M*Hp) with zero-padded hidden lanes.
    w1p = jnp.zeros((dp, n_models, hp), f32)
    w1p = w1p.at[:d_in, :, :hidden].set(jnp.transpose(w1.astype(f32), (1, 0, 2)))
    w1p = w1p.reshape(dp, n_models * hp).astype(matmul_dtype)
    b1p = jnp.zeros((n_models, hp), f32).at[:, :hidden].set(
        b1.astype(f32).reshape(n_models, hidden)).reshape(1, n_models * hp)

    # W2 stays per-model (M, Hp, Pp): no MXU / VMEM blow-up.
    w2p = jnp.zeros((n_models, hp, pp), f32).at[:, :hidden, :pred].set(
        w2.astype(f32)).astype(matmul_dtype)
    b2p = jnp.zeros((n_models, 1, pp), f32).at[:, :, :pred].set(
        b2.astype(f32).reshape(n_models, 1, pred))

    return {
        "w1": w1p, "b1": b1p, "w2": w2p, "b2": b2p,
        "dims": (obs_dim, action_dim, pred, dp, hp, pp, n_models),
        "matmul_dtype": jnp.dtype(matmul_dtype),
    }


# --------------------------------------------------------------------------- #
# Forward wrapper.
# --------------------------------------------------------------------------- #
def disagreement_forward(obs, action, next_obs, packed, *, tile_b=512):
    """Pallas equivalent of Disagreement.forward -> (B, n_models) L2 errors."""
    obs_dim, action_dim, pred, dp, hp, pp, n_models = packed["dims"]
    w1p, b1p, w2p, b2p = packed["w1"], packed["b1"], packed["w2"], packed["b2"]
    mm_dtype = packed["matmul_dtype"]
    f32 = jnp.float32

    assert obs.shape[0] == next_obs.shape[0] == action.shape[0]
    assert obs.shape[-1] == obs_dim and action.shape[-1] == action_dim
    assert next_obs.shape[-1] == pred
    batch = obs.shape[0]
    d_in = obs_dim + action_dim

    # ---- Batch tiling --------------------------------------------------------
    assert tile_b % 8 == 0
    if batch <= tile_b:
        tb = _round_up(batch, 8)
        # Split big single tiles so ("parallel",) can shard across v7x's 2 cores.
        if tb >= 256:
            tb = _round_up((tb + 1) // 2, 8)
    else:
        tb = tile_b
    b_pad = _round_up(batch, tb)
    n_tiles = b_pad // tb

    # Fused layer-1 input: concat once in the wrapper, pad batch + sublane dims.
    x = jnp.concatenate([obs.astype(f32), action.astype(f32)], axis=-1)
    x = jnp.pad(x, ((0, b_pad - batch), (0, dp - d_in))).astype(mm_dtype)
    nxt = jnp.pad(next_obs.astype(f32), ((0, b_pad - batch), (0, pp - pred)))

    out_w = 128        # lane-dense output slab; sliced to n_models on return

    # ---- VMEM budget: resident weights + pipelined activation tiles ---------
    wbytes = int(w1p.size * w1p.dtype.itemsize + w2p.size * w2p.dtype.itemsize
                 + (b1p.size + b2p.size) * 4)
    abytes = int(tb * (dp * jnp.dtype(mm_dtype).itemsize + pp * 4 + out_w * 4))
    hbytes = int(tb * (n_models * hp + 2 * pp + out_w) * 4)
    vmem_limit = int(min(64 * 2 ** 20,
                         max(32 * 2 ** 20, 2 * wbytes + 2 * abytes + 2 * hbytes)))

    def call(single_buffer_weights):
        cmap2 = lambda i: (0, 0)
        cmap3 = lambda i: (0, 0, 0)
        wkw = {}
        if single_buffer_weights and hasattr(pl, "Buffered"):
            # Weights are grid-resident (constant index map); one buffer suffices.
            wkw = dict(pipeline_mode=pl.Buffered(1))
        in_specs = [
            pl.BlockSpec((tb, dp), lambda i: (i, 0)),            # [obs|action] tile
            pl.BlockSpec((tb, pp), lambda i: (i, 0)),            # next_obs tile
            pl.BlockSpec((dp, n_models * hp), cmap2, **wkw),     # W1 packed
            pl.BlockSpec((1, n_models * hp), cmap2, **wkw),      # b1 packed
            pl.BlockSpec((n_models, hp, pp), cmap3, **wkw),      # W2 per-model
            pl.BlockSpec((n_models, 1, pp), cmap3, **wkw),       # b2 per-model
        ]
        return pl.pallas_call(
            _disagreement_kernel,
            out_shape=jax.ShapeDtypeStruct((b_pad, out_w), f32),
            grid_spec=pltpu.PrefetchScalarGridSpec(
                num_scalar_prefetch=0,
                grid=(n_tiles,),
                in_specs=in_specs,
                out_specs=pl.BlockSpec((tb, out_w), lambda i: (i, 0)),
            ),
            compiler_params=pltpu.CompilerParams(
                dimension_semantics=("parallel",),
                vmem_limit_bytes=vmem_limit),
        )(x, nxt, w1p, b1p, w2p, b2p)

    try:
        out = call(True)
    except Exception:
        # JAX versions without single-buffer pipeline_mode support: fall back to
        # default double-buffered resident weights (semantics unchanged).
        out = call(False)

    return out[:batch, :n_models]


# --------------------------------------------------------------------------- #
# Reference + demo.
# --------------------------------------------------------------------------- #
def _reference_forward(obs, action, next_obs, params):
    """Pure NumPy float64 reference mirroring the PyTorch module."""
    w1, b1, w2, b2 = (np.asarray(p, np.float64) for p in params)
    x = np.concatenate([np.asarray(obs, np.float64),
                        np.asarray(action, np.float64)], axis=-1)
    nxt = np.asarray(next_obs, np.float64)
    cols = []
    for m in range(w1.shape[0]):
        h = np.maximum(x @ w1[m] + b1[m], 0.0)
        y = h @ w2[m] + b2[m]
        cols.append(np.linalg.norm(nxt - y, axis=-1, keepdims=True))
    return np.concatenate(cols, axis=1)


if __name__ == "__main__":
    B, obs_dim, action_dim, hidden_dim, n_models = 8, 32, 8, 32, 5

    key = jax.random.PRNGKey(0)
    k_obs, k_act, k_nxt, k_par = jax.random.split(key, 4)
    obs = jax.random.normal(k_obs, (B, obs_dim), jnp.float32)
    action = jax.random.normal(k_act, (B, action_dim), jnp.float32)
    next_obs = jax.random.normal(k_nxt, (B, obs_dim), jnp.float32)
    params = init_params(k_par, obs_dim, action_dim, hidden_dim, n_models)

    ref = _reference_forward(obs, action, next_obs, params)

    # f32 MXU path: tight parity with the reference.
    packed_f32 = pack_params(params, obs_dim, action_dim, matmul_dtype=jnp.float32)
    out_f32 = jax.block_until_ready(
        disagreement_forward(obs, action, next_obs, packed_f32))
    assert out_f32.shape == (B, n_models), out_f32.shape
    assert np.allclose(np.asarray(out_f32, np.float64), ref, atol=5e-3, rtol=5e-3)

    # bf16 MXU operands / f32 accumulate: the fast path (looser tolerance).
    packed_bf16 = pack_params(params, obs_dim, action_dim, matmul_dtype=jnp.bfloat16)
    out_bf16 = jax.block_until_ready(
        disagreement_forward(obs, action, next_obs, packed_bf16))
    assert out_bf16.shape == (B, n_models), out_bf16.shape
    assert np.allclose(np.asarray(out_bf16, np.float64), ref, atol=5e-2, rtol=5e-2)

    print("KERNEL_OK")
</pallas_src>

<mosaic_0001>
module attributes {stable_mosaic.version = 11 : i64} {
  func.func @_disagreement_kernel(%arg0: i32, %arg1: memref<8x40xf32, #tpu.memory_space<vmem>>, %arg2: memref<8x128xf32, #tpu.memory_space<vmem>>, %arg3: memref<40x640xf32, #tpu.memory_space<vmem>>, %arg4: memref<1x640xf32, #tpu.memory_space<vmem>>, %arg5: memref<5x128x128xf32, #tpu.memory_space<vmem>>, %arg6: memref<5x1x128xf32, #tpu.memory_space<vmem>>, %arg7: memref<8x128xf32, #tpu.memory_space<vmem>>) attributes {dimension_semantics = [#tpu.dimension_semantics<parallel>], iteration_bounds = array<i64: 1>, scalar_prefetch = 0 : i64, scratch_operands = 0 : i64, tpu.core_type = #tpu.core_type<tc>, window_params = [{transform_indices = @transform_0, window_bounds = array<i64: 8, 40>}, {transform_indices = @transform_1, window_bounds = array<i64: 8, 128>}, {pipeline_mode = #tpu.pipeline_mode<synchronous>, transform_indices = @transform_2, window_bounds = array<i64: 40, 640>}, {pipeline_mode = #tpu.pipeline_mode<synchronous>, transform_indices = @transform_3, window_bounds = array<i64: 1, 640>}, {pipeline_mode = #tpu.pipeline_mode<synchronous>, transform_indices = @transform_4, window_bounds = array<i64: 5, 128, 128>}, {pipeline_mode = #tpu.pipeline_mode<synchronous>, transform_indices = @transform_5, window_bounds = array<i64: 5, 1, 128>}, {transform_indices = @transform_6, window_bounds = array<i64: 8, 128>}]} {
    %c0 = arith.constant 0 : index
    %c0_0 = arith.constant 0 : index
    %0 = vector.load %arg1[%c0, %c0_0] : memref<8x40xf32, #tpu.memory_space<vmem>>, vector<8x40xf32>
    %c0_1 = arith.constant 0 : index
    %c0_2 = arith.constant 0 : index
    %1 = vector.load %arg3[%c0_1, %c0_2] : memref<40x640xf32, #tpu.memory_space<vmem>>, vector<40x640xf32>
    %cst = arith.constant dense<0.000000e+00> : vector<8x640xf32>
    %2 = tpu.matmul %0, %1, %cst {dimension_numbers = #tpu.dot_dimension_numbers<[1], [0], [0], [1], [0, 0, 1, 1], [], []>} : vector<8x40xf32>, vector<40x640xf32>, vector<8x640xf32> -> vector<8x640xf32>
    %c0_3 = arith.constant 0 : index
    %c0_4 = arith.constant 0 : index
    %3 = vector.load %arg4[%c0_3, %c0_4] : memref<1x640xf32, #tpu.memory_space<vmem>>, vector<1x640xf32>
    %4 = vector.broadcast %3 : vector<1x640xf32> to vector<8x640xf32>
    %5 = arith.addf %2, %4 : vector<8x640xf32>
    %cst_5 = arith.constant 0.000000e+00 : f32
    %6 = vector.broadcast %cst_5 : f32 to vector<8x640xf32>
    %7 = arith.maximumf %5, %6 : vector<8x640xf32>
    %c0_6 = arith.constant 0 : index
    %c0_7 = arith.constant 0 : index
    %8 = vector.load %arg2[%c0_6, %c0_7] : memref<8x128xf32, #tpu.memory_space<vmem>>, vector<8x128xf32>
    %9 = tpu.iota {dimensions = array<i32: 1>} : vector<8x128xi32>
    %cst_8 = arith.constant 0.000000e+00 : f32
    %10 = vector.broadcast %cst_8 : f32 to vector<8x128xf32>
    %11 = vector.extract_strided_slice %7 {offsets = [0, 0], sizes = [8, 128], strides = [1, 1]} : vector<8x640xf32> to vector<8x128xf32>
    %c0_9 = arith.constant 0 : index
    %c0_10 = arith.constant 0 : index
    %c0_11 = arith.constant 0 : index
    %12 = vector.load %arg5[%c0_9, %c0_10, %c0_11] : memref<5x128x128xf32, #tpu.memory_space<vmem>>, vector<1x128x128xf32>
    %13 = vector.shape_cast %12 : vector<1x128x128xf32> to vector<128x128xf32>
    %cst_12 = arith.constant dense<0.000000e+00> : vector<8x128xf32>
    %14 = tpu.matmul %11, %13, %cst_12 {dimension_numbers = #tpu.dot_dimension_numbers<[1], [0], [0], [1], [0, 0, 1, 1], [], []>} : vector<8x128xf32>, vector<128x128xf32>, vector<8x128xf32> -> vector<8x128xf32>
    %c0_13 = arith.constant 0 : index
    %c0_14 = arith.constant 0 : index
    %c0_15 = arith.constant 0 : index
    %15 = vector.load %arg6[%c0_13, %c0_14, %c0_15] : memref<5x1x128xf32, #tpu.memory_space<vmem>>, vector<1x1x128xf32>
    %16 = vector.shape_cast %15 : vector<1x1x128xf32> to vector<1x128xf32>
    %17 = vector.broadcast %16 : vector<1x128xf32> to vector<8x128xf32>
    %18 = arith.addf %14, %17 : vector<8x128xf32>
    %19 = arith.subf %8, %18 : vector<8x128xf32>
    %20 = arith.mulf %19, %19 : vector<8x128xf32>
    %cst_16 = arith.constant dense<0.000000e+00> : vector<8xf32>
    %21 = vector.multi_reduction <add>, %20, %cst_16 [1] : vector<8x128xf32> to vector<8xf32>
    %22 = vector.shape_cast %21 : vector<8xf32> to vector<8x1xf32>
    %c0_i32 = arith.constant 0 : i32
    %23 = vector.broadcast %c0_i32 : i32 to vector<8x128xi32>
    %24 = arith.cmpi eq, %9, %23 : vector<8x128xi32>
    %cst_17 = arith.constant 0.000000e+00 : f32
    %25 = vector.shape_cast %22 : vector<8x1xf32> to vector<8x1xf32>
    %26 = vector.broadcast %25 : vector<8x1xf32> to vector<8x128xf32>
    %27 = vector.broadcast %cst_17 : f32 to vector<8x128xf32>
    %28 = arith.select %24, %26, %27 : vector<8x128xi1>, vector<8x128xf32>
    %29 = arith.addf %10, %28 : vector<8x128xf32>
    %30 = vector.extract_strided_slice %7 {offsets = [0, 128], sizes = [8, 128], strides = [1, 1]} : vector<8x640xf32> to vector<8x128xf32>
    %c1 = arith.constant 1 : index
    %c0_18 = arith.constant 0 : index
    %c0_19 = arith.constant 0 : index
    %31 = vector.load %arg5[%c1, %c0_18, %c0_19] : memref<5x128x128xf32, #tpu.memory_space<vmem>>, vector<1x128x128xf32>
    %32 = vector.shape_cast %31 : vector<1x128x128xf32> to vector<128x128xf32>
    %cst_20 = arith.constant dense<0.000000e+00> : vector<8x128xf32>
    %33 = tpu.matmul %30, %32, %cst_20 {dimension_numbers = #tpu.dot_dimension_numbers<[1], [0], [0], [1], [0, 0, 1, 1], [], []>} : vector<8x128xf32>, vector<128x128xf32>, vector<8x128xf32> -> vector<8x128xf32>
    %c1_21 = arith.constant 1 : index
    %c0_22 = arith.constant 0 : index
    %c0_23 = arith.constant 0 : index
    %34 = vector.load %arg6[%c1_21, %c0_22, %c0_23] : memref<5x1x128xf32, #tpu.memory_space<vmem>>, vector<1x1x128xf32>
    %35 = vector.shape_cast %34 : vector<1x1x128xf32> to vector<1x128xf32>
    %36 = vector.broadcast %35 : vector<1x128xf32> to vector<8x128xf32>
    %37 = arith.addf %33, %36 : vector<8x128xf32>
    %38 = arith.subf %8, %37 : vector<8x128xf32>
    %39 = arith.mulf %38, %38 : vector<8x128xf32>
    %cst_24 = arith.constant dense<0.000000e+00> : vector<8xf32>
    %40 = vector.multi_reduction <add>, %39, %cst_24 [1] : vector<8x128xf32> to vector<8xf32>
    %41 = vector.shape_cast %40 : vector<8xf32> to vector<8x1xf32>
    %c1_i32 = arith.constant 1 : i32
    %42 = vector.broadcast %c1_i32 : i32 to vector<8x128xi32>
    %43 = arith.cmpi eq, %9, %42 : vector<8x128xi32>
    %cst_25 = arith.constant 0.000000e+00 : f32
    %44 = vector.shape_cast %41 : vector<8x1xf32> to vector<8x1xf32>
    %45 = vector.broadcast %44 : vector<8x1xf32> to vector<8x128xf32>
    %46 = vector.broadcast %cst_25 : f32 to vector<8x128xf32>
    %47 = arith.select %43, %45, %46 : vector<8x128xi1>, vector<8x128xf32>
    %48 = arith.addf %29, %47 : vector<8x128xf32>
    %49 = vector.extract_strided_slice %7 {offsets = [0, 256], sizes = [8, 128], strides = [1, 1]} : vector<8x640xf32> to vector<8x128xf32>
    %c2 = arith.constant 2 : index
    %c0_26 = arith.constant 0 : index
    %c0_27 = arith.constant 0 : index
    %50 = vector.load %arg5[%c2, %c0_26, %c0_27] : memref<5x128x128xf32, #tpu.memory_space<vmem>>, vector<1x128x128xf32>
    %51 = vector.shape_cast %50 : vector<1x128x128xf32> to vector<128x128xf32>
    %cst_28 = arith.constant dense<0.000000e+00> : vector<8x128xf32>
    %52 = tpu.matmul %49, %51, %cst_28 {dimension_numbers = #tpu.dot_dimension_numbers<[1], [0], [0], [1], [0, 0, 1, 1], [], []>} : vector<8x128xf32>, vector<128x128xf32>, vector<8x128xf32> -> vector<8x128xf32>
    %c2_29 = arith.constant 2 : index
    %c0_30 = arith.constant 0 : index
    %c0_31 = arith.constant 0 : index
    %53 = vector.load %arg6[%c2_29, %c0_30, %c0_31] : memref<5x1x128xf32, #tpu.memory_space<vmem>>, vector<1x1x128xf32>
    %54 = vector.shape_cast %53 : vector<1x1x128xf32> to vector<1x128xf32>
    %55 = vector.broadcast %54 : vector<1x128xf32> to vector<8x128xf32>
    %56 = arith.addf %52, %55 : vector<8x128xf32>
    %57 = arith.subf %8, %56 : vector<8x128xf32>
    %58 = arith.mulf %57, %57 : vector<8x128xf32>
    %cst_32 = arith.constant dense<0.000000e+00> : vector<8xf32>
    %59 = vector.multi_reduction <add>, %58, %cst_32 [1] : vector<8x128xf32> to vector<8xf32>
    %60 = vector.shape_cast %59 : vector<8xf32> to vector<8x1xf32>
    %c2_i32 = arith.constant 2 : i32
    %61 = vector.broadcast %c2_i32 : i32 to vector<8x128xi32>
    %62 = arith.cmpi eq, %9, %61 : vector<8x128xi32>
    %cst_33 = arith.constant 0.000000e+00 : f32
    %63 = vector.shape_cast %60 : vector<8x1xf32> to vector<8x1xf32>
    %64 = vector.broadcast %63 : vector<8x1xf32> to vector<8x128xf32>
    %65 = vector.broadcast %cst_33 : f32 to vector<8x128xf32>
    %66 = arith.select %62, %64, %65 : vector<8x128xi1>, vector<8x128xf32>
    %67 = arith.addf %48, %66 : vector<8x128xf32>
    %68 = vector.extract_strided_slice %7 {offsets = [0, 384], sizes = [8, 128], strides = [1, 1]} : vector<8x640xf32> to vector<8x128xf32>
    %c3 = arith.constant 3 : index
    %c0_34 = arith.constant 0 : index
    %c0_35 = arith.constant 0 : index
    %69 = vector.load %arg5[%c3, %c0_34, %c0_35] : memref<5x128x128xf32, #tpu.memory_space<vmem>>, vector<1x128x128xf32>
    %70 = vector.shape_cast %69 : vector<1x128x128xf32> to vector<128x128xf32>
    %cst_36 = arith.constant dense<0.000000e+00> : vector<8x128xf32>
    %71 = tpu.matmul %68, %70, %cst_36 {dimension_numbers = #tpu.dot_dimension_numbers<[1], [0], [0], [1], [0, 0, 1, 1], [], []>} : vector<8x128xf32>, vector<128x128xf32>, vector<8x128xf32> -> vector<8x128xf32>
    %c3_37 = arith.constant 3 : index
    %c0_38 = arith.constant 0 : index
    %c0_39 = arith.constant 0 : index
    %72 = vector.load %arg6[%c3_37, %c0_38, %c0_39] : memref<5x1x128xf32, #tpu.memory_space<vmem>>, vector<1x1x128xf32>
    %73 = vector.shape_cast %72 : vector<1x1x128xf32> to vector<1x128xf32>
    %74 = vector.broadcast %73 : vector<1x128xf32> to vector<8x128xf32>
    %75 = arith.addf %71, %74 : vector<8x128xf32>
    %76 = arith.subf %8, %75 : vector<8x128xf32>
    %77 = arith.mulf %76, %76 : vector<8x128xf32>
    %cst_40 = arith.constant dense<0.000000e+00> : vector<8xf32>
    %78 = vector.multi_reduction <add>, %77, %cst_40 [1] : vector<8x128xf32> to vector<8xf32>
    %79 = vector.shape_cast %78 : vector<8xf32> to vector<8x1xf32>
    %c3_i32 = arith.constant 3 : i32
    %80 = vector.broadcast %c3_i32 : i32 to vector<8x128xi32>
    %81 = arith.cmpi eq, %9, %80 : vector<8x128xi32>
    %cst_41 = arith.constant 0.000000e+00 : f32
    %82 = vector.shape_cast %79 : vector<8x1xf32> to vector<8x1xf32>
    %83 = vector.broadcast %82 : vector<8x1xf32> to vector<8x128xf32>
    %84 = vector.broadcast %cst_41 : f32 to vector<8x128xf32>
    %85 = arith.select %81, %83, %84 : vector<8x128xi1>, vector<8x128xf32>
    %86 = arith.addf %67, %85 : vector<8x128xf32>
    %87 = vector.extract_strided_slice %7 {offsets = [0, 512], sizes = [8, 128], strides = [1, 1]} : vector<8x640xf32> to vector<8x128xf32>
    %c4 = arith.constant 4 : index
    %c0_42 = arith.constant 0 : index
    %c0_43 = arith.constant 0 : index
    %88 = vector.load %arg5[%c4, %c0_42, %c0_43] : memref<5x128x128xf32, #tpu.memory_space<vmem>>, vector<1x128x128xf32>
    %89 = vector.shape_cast %88 : vector<1x128x128xf32> to vector<128x128xf32>
    %cst_44 = arith.constant dense<0.000000e+00> : vector<8x128xf32>
    %90 = tpu.matmul %87, %89, %cst_44 {dimension_numbers = #tpu.dot_dimension_numbers<[1], [0], [0], [1], [0, 0, 1, 1], [], []>} : vector<8x128xf32>, vector<128x128xf32>, vector<8x128xf32> -> vector<8x128xf32>
    %c4_45 = arith.constant 4 : index
    %c0_46 = arith.constant 0 : index
    %c0_47 = arith.constant 0 : index
    %91 = vector.load %arg6[%c4_45, %c0_46, %c0_47] : memref<5x1x128xf32, #tpu.memory_space<vmem>>, vector<1x1x128xf32>
    %92 = vector.shape_cast %91 : vector<1x1x128xf32> to vector<1x128xf32>
    %93 = vector.broadcast %92 : vector<1x128xf32> to vector<8x128xf32>
    %94 = arith.addf %90, %93 : vector<8x128xf32>
    %95 = arith.subf %8, %94 : vector<8x128xf32>
    %96 = arith.mulf %95, %95 : vector<8x128xf32>
    %cst_48 = arith.constant dense<0.000000e+00> : vector<8xf32>
    %97 = vector.multi_reduction <add>, %96, %cst_48 [1] : vector<8x128xf32> to vector<8xf32>
    %98 = vector.shape_cast %97 : vector<8xf32> to vector<8x1xf32>
    %c4_i32 = arith.constant 4 : i32
    %99 = vector.broadcast %c4_i32 : i32 to vector<8x128xi32>
    %100 = arith.cmpi eq, %9, %99 : vector<8x128xi32>
    %cst_49 = arith.constant 0.000000e+00 : f32
    %101 = vector.shape_cast %98 : vector<8x1xf32> to vector<8x1xf32>
    %102 = vector.broadcast %101 : vector<8x1xf32> to vector<8x128xf32>
    %103 = vector.broadcast %cst_49 : f32 to vector<8x128xf32>
    %104 = arith.select %100, %102, %103 : vector<8x128xi1>, vector<8x128xf32>
    %105 = arith.addf %86, %104 : vector<8x128xf32>
    %106 = math.sqrt %105 : vector<8x128xf32>
    %c0_50 = arith.constant 0 : index
    %c0_51 = arith.constant 0 : index
    %107 = vector.load %arg7[%c0_50, %c0_51] : memref<8x128xf32, #tpu.memory_space<vmem>>, vector<8x128xf32>
    tpu.vector_store %arg7[%c0_50, %c0_51], %106 {strides = array<i32>} : memref<8x128xf32, #tpu.memory_space<vmem>>, vector<8x128xf32>,
    return
  }
  func.func @transform_0(%arg0: i32) -> (i32, i32) {
    %c0_i32 = arith.constant 0 : i32
    %c0_i32_0 = arith.constant 0 : i32
    return %arg0, %c0_i32 : i32, i32
  }
  func.func @transform_1(%arg0: i32) -> (i32, i32) {
    %c0_i32 = arith.constant 0 : i32
    %c0_i32_0 = arith.constant 0 : i32
    return %arg0, %c0_i32 : i32, i32
  }
  func.func @transform_2(%arg0: i32) -> (i32, i32) {
    %c0_i32 = arith.constant 0 : i32
    %c0_i32_0 = arith.constant 0 : i32
    %c0_i32_1 = arith.constant 0 : i32
    return %c0_i32, %c0_i32_0 : i32, i32
  }
  func.func @transform_3(%arg0: i32) -> (i32, i32) {
    %c0_i32 = arith.constant 0 : i32
    %c0_i32_0 = arith.constant 0 : i32
    %c0_i32_1 = arith.constant 0 : i32
    return %c0_i32, %c0_i32_0 : i32, i32
  }
  func.func @transform_4(%arg0: i32) -> (i32, i32, i32) {
    %c0_i32 = arith.constant 0 : i32
    %c0_i32_0 = arith.constant 0 : i32
    %c0_i32_1 = arith.constant 0 : i32
    %c0_i32_2 = arith.constant 0 : i32
    return %c0_i32, %c0_i32_0, %c0_i32_1 : i32, i32, i32
  }
  func.func @transform_5(%arg0: i32) -> (i32, i32, i32) {
    %c0_i32 = arith.constant 0 : i32
    %c0_i32_0 = arith.constant 0 : i32
    %c0_i32_1 = arith.constant 0 : i32
    %c0_i32_2 = arith.constant 0 : i32
    return %c0_i32, %c0_i32_0, %c0_i32_1 : i32, i32, i32
  }
  func.func @transform_6(%arg0: i32) -> (i32, i32) {
    %c0_i32 = arith.constant 0 : i32
    %c0_i32_0 = arith.constant 0 : i32
    return %arg0, %c0_i32 : i32, i32
  }
}

module attributes {stable_mosaic.version = 11 : i64} {
  func.func @_disagreement_kernel(%arg0: i32, %arg1: memref<8x40xf32, #tpu.memory_space<vmem>>, %arg2: memref<8x128xf32, #tpu.memory_space<vmem>>, %arg3: memref<40x640xf32, #tpu.memory_space<vmem>>, %arg4: memref<1x640xf32, #tpu.memory_space<vmem>>, %arg5: memref<5x128x128xf32, #tpu.memory_space<vmem>>, %arg6: memref<5x1x128xf32, #tpu.memory_space<vmem>>, %arg7: memref<8x128xf32, #tpu.memory_space<vmem>>) attributes {dimension_semantics = [#tpu.dimension_semantics<parallel>], iteration_bounds = array<i64: 1>, scalar_prefetch = 0 : i64, scratch_operands = 0 : i64, tpu.core_type = #tpu.core_type<tc>, window_params = [{transform_indices = @transform_0, window_bounds = array<i64: 8, 40>}, {transform_indices = @transform_1, window_bounds = array<i64: 8, 128>}, {pipeline_mode = #tpu.pipeline_mode<synchronous>, transform_indices = @transform_2, window_bounds = array<i64: 40, 640>}, {pipeline_mode = #tpu.pipeline_mode<synchronous>, transform_indices = @transform_3, window_bounds = array<i64: 1, 640>}, {pipeline_mode = #tpu.pipeline_mode<synchronous>, transform_indices = @transform_4, window_bounds = array<i64: 5, 128, 128>}, {pipeline_mode = #tpu.pipeline_mode<synchronous>, transform_indices = @transform_5, window_bounds = array<i64: 5, 1, 128>}, {transform_indices = @transform_6, window_bounds = array<i64: 8, 128>}]} {
    %c0 = arith.constant 0 : index
    %c0_0 = arith.constant 0 : index
    %0 = vector.load %arg1[%c0, %c0_0] : memref<8x40xf32, #tpu.memory_space<vmem>>, vector<8x40xf32>
    %c0_1 = arith.constant 0 : index
    %c0_2 = arith.constant 0 : index
    %1 = vector.load %arg3[%c0_1, %c0_2] : memref<40x640xf32, #tpu.memory_space<vmem>>, vector<40x640xf32>
    %cst = arith.constant dense<0.000000e+00> : vector<8x640xf32>
    %2 = tpu.matmul %0, %1, %cst {dimension_numbers = #tpu.dot_dimension_numbers<[1], [0], [0], [1], [0, 0, 1, 1], [], []>} : vector<8x40xf32>, vector<40x640xf32>, vector<8x640xf32> -> vector<8x640xf32>
    %c0_3 = arith.constant 0 : index
    %c0_4 = arith.constant 0 : index
    %3 = vector.load %arg4[%c0_3, %c0_4] : memref<1x640xf32, #tpu.memory_space<vmem>>, vector<1x640xf32>
    %4 = vector.broadcast %3 : vector<1x640xf32> to vector<8x640xf32>
    %5 = arith.addf %2, %4 : vector<8x640xf32>
    %cst_5 = arith.constant 0.000000e+00 : f32
    %6 = vector.broadcast %cst_5 : f32 to vector<8x640xf32>
    %7 = arith.maximumf %5, %6 : vector<8x640xf32>
    %c0_6 = arith.constant 0 : index
    %c0_7 = arith.constant 0 : index
    %8 = vector.load %arg2[%c0_6, %c0_7] : memref<8x128xf32, #tpu.memory_space<vmem>>, vector<8x128xf32>
    %9 = tpu.iota {dimensions = array<i32: 1>} : vector<8x128xi32>
    %cst_8 = arith.constant 0.000000e+00 : f32
    %10 = vector.broadcast %cst_8 : f32 to vector<8x128xf32>
    %11 = vector.extract_strided_slice %7 {offsets = [0, 0], sizes = [8, 128], strides = [1, 1]} : vector<8x640xf32> to vector<8x128xf32>
    %c0_9 = arith.constant 0 : index
    %c0_10 = arith.constant 0 : index
    %c0_11 = arith.constant 0 : index
    %12 = vector.load %arg5[%c0_9, %c0_10, %c0_11] : memref<5x128x128xf32, #tpu.memory_space<vmem>>, vector<1x128x128xf32>
    %13 = vector.shape_cast %12 : vector<1x128x128xf32> to vector<128x128xf32>
    %cst_12 = arith.constant dense<0.000000e+00> : vector<8x128xf32>
    %14 = tpu.matmul %11, %13, %cst_12 {dimension_numbers = #tpu.dot_dimension_numbers<[1], [0], [0], [1], [0, 0, 1, 1], [], []>} : vector<8x128xf32>, vector<128x128xf32>, vector<8x128xf32> -> vector<8x128xf32>
    %c0_13 = arith.constant 0 : index
    %c0_14 = arith.constant 0 : index
    %c0_15 = arith.constant 0 : index
    %15 = vector.load %arg6[%c0_13, %c0_14, %c0_15] : memref<5x1x128xf32, #tpu.memory_space<vmem>>, vector<1x1x128xf32>
    %16 = vector.shape_cast %15 : vector<1x1x128xf32> to vector<1x128xf32>
    %17 = vector.broadcast %16 : vector<1x128xf32> to vector<8x128xf32>
    %18 = arith.addf %14, %17 : vector<8x128xf32>
    %19 = arith.subf %8, %18 : vector<8x128xf32>
    %20 = arith.mulf %19, %19 : vector<8x128xf32>
    %cst_16 = arith.constant dense<0.000000e+00> : vector<8xf32>
    %21 = vector.multi_reduction <add>, %20, %cst_16 [1] : vector<8x128xf32> to vector<8xf32>
    %22 = vector.shape_cast %21 : vector<8xf32> to vector<8x1xf32>
    %c0_i32 = arith.constant 0 : i32
    %23 = vector.broadcast %c0_i32 : i32 to vector<8x128xi32>
    %24 = arith.cmpi eq, %9, %23 : vector<8x128xi32>
    %cst_17 = arith.constant 0.000000e+00 : f32
    %25 = vector.shape_cast %22 : vector<8x1xf32> to vector<8x1xf32>
    %26 = vector.broadcast %25 : vector<8x1xf32> to vector<8x128xf32>
    %27 = vector.broadcast %cst_17 : f32 to vector<8x128xf32>
    %28 = arith.select %24, %26, %27 : vector<8x128xi1>, vector<8x128xf32>
    %29 = arith.addf %10, %28 : vector<8x128xf32>
    %30 = vector.extract_strided_slice %7 {offsets = [0, 128], sizes = [8, 128], strides = [1, 1]} : vector<8x640xf32> to vector<8x128xf32>
    %c1 = arith.constant 1 : index
    %c0_18 = arith.constant 0 : index
    %c0_19 = arith.constant 0 : index
    %31 = vector.load %arg5[%c1, %c0_18, %c0_19] : memref<5x128x128xf32, #tpu.memory_space<vmem>>, vector<1x128x128xf32>
    %32 = vector.shape_cast %31 : vector<1x128x128xf32> to vector<128x128xf32>
    %cst_20 = arith.constant dense<0.000000e+00> : vector<8x128xf32>
    %33 = tpu.matmul %30, %32, %cst_20 {dimension_numbers = #tpu.dot_dimension_numbers<[1], [0], [0], [1], [0, 0, 1, 1], [], []>} : vector<8x128xf32>, vector<128x128xf32>, vector<8x128xf32> -> vector<8x128xf32>
    %c1_21 = arith.constant 1 : index
    %c0_22 = arith.constant 0 : index
    %c0_23 = arith.constant 0 : index
    %34 = vector.load %arg6[%c1_21, %c0_22, %c0_23] : memref<5x1x128xf32, #tpu.memory_space<vmem>>, vector<1x1x128xf32>
    %35 = vector.shape_cast %34 : vector<1x1x128xf32> to vector<1x128xf32>
    %36 = vector.broadcast %35 : vector<1x128xf32> to vector<8x128xf32>
    %37 = arith.addf %33, %36 : vector<8x128xf32>
    %38 = arith.subf %8, %37 : vector<8x128xf32>
    %39 = arith.mulf %38, %38 : vector<8x128xf32>
    %cst_24 = arith.constant dense<0.000000e+00> : vector<8xf32>
    %40 = vector.multi_reduction <add>, %39, %cst_24 [1] : vector<8x128xf32> to vector<8xf32>
    %41 = vector.shape_cast %40 : vector<8xf32> to vector<8x1xf32>
    %c1_i32 = arith.constant 1 : i32
    %42 = vector.broadcast %c1_i32 : i32 to vector<8x128xi32>
    %43 = arith.cmpi eq, %9, %42 : vector<8x128xi32>
    %cst_25 = arith.constant 0.000000e+00 : f32
    %44 = vector.shape_cast %41 : vector<8x1xf32> to vector<8x1xf32>
    %45 = vector.broadcast %44 : vector<8x1xf32> to vector<8x128xf32>
    %46 = vector.broadcast %cst_25 : f32 to vector<8x128xf32>
    %47 = arith.select %43, %45, %46 : vector<8x128xi1>, vector<8x128xf32>
    %48 = arith.addf %29, %47 : vector<8x128xf32>
    %49 = vector.extract_strided_slice %7 {offsets = [0, 256], sizes = [8, 128], strides = [1, 1]} : vector<8x640xf32> to vector<8x128xf32>
    %c2 = arith.constant 2 : index
    %c0_26 = arith.constant 0 : index
    %c0_27 = arith.constant 0 : index
    %50 = vector.load %arg5[%c2, %c0_26, %c0_27] : memref<5x128x128xf32, #tpu.memory_space<vmem>>, vector<1x128x128xf32>
    %51 = vector.shape_cast %50 : vector<1x128x128xf32> to vector<128x128xf32>
    %cst_28 = arith.constant dense<0.000000e+00> : vector<8x128xf32>
    %52 = tpu.matmul %49, %51, %cst_28 {dimension_numbers = #tpu.dot_dimension_numbers<[1], [0], [0], [1], [0, 0, 1, 1], [], []>} : vector<8x128xf32>, vector<128x128xf32>, vector<8x128xf32> -> vector<8x128xf32>
    %c2_29 = arith.constant 2 : index
    %c0_30 = arith.constant 0 : index
    %c0_31 = arith.constant 0 : index
    %53 = vector.load %arg6[%c2_29, %c0_30, %c0_31] : memref<5x1x128xf32, #tpu.memory_space<vmem>>, vector<1x1x128xf32>
    %54 = vector.shape_cast %53 : vector<1x1x128xf32> to vector<1x128xf32>
    %55 = vector.broadcast %54 : vector<1x128xf32> to vector<8x128xf32>
    %56 = arith.addf %52, %55 : vector<8x128xf32>
    %57 = arith.subf %8, %56 : vector<8x128xf32>
    %58 = arith.mulf %57, %57 : vector<8x128xf32>
    %cst_32 = arith.constant dense<0.000000e+00> : vector<8xf32>
    %59 = vector.multi_reduction <add>, %58, %cst_32 [1] : vector<8x128xf32> to vector<8xf32>
    %60 = vector.shape_cast %59 : vector<8xf32> to vector<8x1xf32>
    %c2_i32 = arith.constant 2 : i32
    %61 = vector.broadcast %c2_i32 : i32 to vector<8x128xi32>
    %62 = arith.cmpi eq, %9, %61 : vector<8x128xi32>
    %cst_33 = arith.constant 0.000000e+00 : f32
    %63 = vector.shape_cast %60 : vector<8x1xf32> to vector<8x1xf32>
    %64 = vector.broadcast %63 : vector<8x1xf32> to vector<8x128xf32>
    %65 = vector.broadcast %cst_33 : f32 to vector<8x128xf32>
    %66 = arith.select %62, %64, %65 : vector<8x128xi1>, vector<8x128xf32>
    %67 = arith.addf %48, %66 : vector<8x128xf32>
    %68 = vector.extract_strided_slice %7 {offsets = [0, 384], sizes = [8, 128], strides = [1, 1]} : vector<8x640xf32> to vector<8x128xf32>
    %c3 = arith.constant 3 : index
    %c0_34 = arith.constant 0 : index
    %c0_35 = arith.constant 0 : index
    %69 = vector.load %arg5[%c3, %c0_34, %c0_35] : memref<5x128x128xf32, #tpu.memory_space<vmem>>, vector<1x128x128xf32>
    %70 = vector.shape_cast %69 : vector<1x128x128xf32> to vector<128x128xf32>
    %cst_36 = arith.constant dense<0.000000e+00> : vector<8x128xf32>
    %71 = tpu.matmul %68, %70, %cst_36 {dimension_numbers = #tpu.dot_dimension_numbers<[1], [0], [0], [1], [0, 0, 1, 1], [], []>} : vector<8x128xf32>, vector<128x128xf32>, vector<8x128xf32> -> vector<8x128xf32>
    %c3_37 = arith.constant 3 : index
    %c0_38 = arith.constant 0 : index
    %c0_39 = arith.constant 0 : index
    %72 = vector.load %arg6[%c3_37, %c0_38, %c0_39] : memref<5x1x128xf32, #tpu.memory_space<vmem>>, vector<1x1x128xf32>
    %73 = vector.shape_cast %72 : vector<1x1x128xf32> to vector<1x128xf32>
    %74 = vector.broadcast %73 : vector<1x128xf32> to vector<8x128xf32>
    %75 = arith.addf %71, %74 : vector<8x128xf32>
    %76 = arith.subf %8, %75 : vector<8x128xf32>
    %77 = arith.mulf %76, %76 : vector<8x128xf32>
    %cst_40 = arith.constant dense<0.000000e+00> : vector<8xf32>
    %78 = vector.multi_reduction <add>, %77, %cst_40 [1] : vector<8x128xf32> to vector<8xf32>
    %79 = vector.shape_cast %78 : vector<8xf32> to vector<8x1xf32>
    %c3_i32 = arith.constant 3 : i32
    %80 = vector.broadcast %c3_i32 : i32 to vector<8x128xi32>
    %81 = arith.cmpi eq, %9, %80 : vector<8x128xi32>
    %cst_41 = arith.constant 0.000000e+00 : f32
    %82 = vector.shape_cast %79 : vector<8x1xf32> to vector<8x1xf32>
    %83 = vector.broadcast %82 : vector<8x1xf32> to vector<8x128xf32>
    %84 = vector.broadcast %cst_41 : f32 to vector<8x128xf32>
    %85 = arith.select %81, %83, %84 : vector<8x128xi1>, vector<8x128xf32>
    %86 = arith.addf %67, %85 : vector<8x128xf32>
    %87 = vector.extract_strided_slice %7 {offsets = [0, 512], sizes = [8, 128], strides = [1, 1]} : vector<8x640xf32> to vector<8x128xf32>
    %c4 = arith.constant 4 : index
    %c0_42 = arith.constant 0 : index
    %c0_43 = arith.constant 0 : index
    %88 = vector.load %arg5[%c4, %c0_42, %c0_43] : memref<5x128x128xf32, #tpu.memory_space<vmem>>, vector<1x128x128xf32>
    %89 = vector.shape_cast %88 : vector<1x128x128xf32> to vector<128x128xf32>
    %cst_44 = arith.constant dense<0.000000e+00> : vector<8x128xf32>
    %90 = tpu.matmul %87, %89, %cst_44 {dimension_numbers = #tpu.dot_dimension_numbers<[1], [0], [0], [1], [0, 0, 1, 1], [], []>} : vector<8x128xf32>, vector<128x128xf32>, vector<8x128xf32> -> vector<8x128xf32>
    %c4_45 = arith.constant 4 : index
    %c0_46 = arith.constant 0 : index
    %c0_47 = arith.constant 0 : index
    %91 = vector.load %arg6[%c4_45, %c0_46, %c0_47] : memref<5x1x128xf32, #tpu.memory_space<vmem>>, vector<1x1x128xf32>
    %92 = vector.shape_cast %91 : vector<1x1x128xf32> to vector<1x128xf32>
    %93 = vector.broadcast %92 : vector<1x128xf32> to vector<8x128xf32>
    %94 = arith.addf %90, %93 : vector<8x128xf32>
    %95 = arith.subf %8, %94 : vector<8x128xf32>
    %96 = arith.mulf %95, %95 : vector<8x128xf32>
    %cst_48 = arith.constant dense<0.000000e+00> : vector<8xf32>
    %97 = vector.multi_reduction <add>, %96, %cst_48 [1] : vector<8x128xf32> to vector<8xf32>
    %98 = vector.shape_cast %97 : vector<8xf32> to vector<8x1xf32>
    %c4_i32 = arith.constant 4 : i32
    %99 = vector.broadcast %c4_i32 : i32 to vector<8x128xi32>
    %100 = arith.cmpi eq, %9, %99 : vector<8x128xi32>
    %cst_49 = arith.constant 0.000000e+00 : f32
    %101 = vector.shape_cast %98 : vector<8x1xf32> to vector<8x1xf32>
    %102 = vector.broadcast %101 : vector<8x1xf32> to vector<8x128xf32>
    %103 = vector.broadcast %cst_49 : f32 to vector<8x128xf32>
    %104 = arith.select %100, %102, %103 : vector<8x128xi1>, vector<8x128xf32>
    %105 = arith.addf %86, %104 : vector<8x128xf32>
    %106 = math.sqrt %105 : vector<8x128xf32>
    %c0_50 = arith.constant 0 : index
    %c0_51 = arith.constant 0 : index
    %107 = vector.load %arg7[%c0_50, %c0_51] : memref<8x128xf32, #tpu.memory_space<vmem>>, vector<8x128xf32>
    tpu.vector_store %arg7[%c0_50, %c0_51], %106 {strides = array<i32>} : memref<8x128xf32, #tpu.memory_space<vmem>>, vector<8x128xf32>,
    return
  }
  func.func @transform_0(%arg0: i32) -> (i32, i32) {
    %c0_i32 = arith.constant 0 : i32
    %c0_i32_0 = arith.constant 0 : i32
    return %arg0, %c0_i32 : i32, i32
  }
  func.func @transform_1(%arg0: i32) -> (i32, i32) {
    %c0_i32 = arith.constant 0 : i32
    %c0_i32_0 = arith.constant 0 : i32
    return %arg0, %c0_i32 : i32, i32
  }
  func.func @transform_2(%arg0: i32) -> (i32, i32) {
    %c0_i32 = arith.constant 0 : i32
    %c0_i32_0 = arith.constant 0 : i32
    %c0_i32_1 = arith.constant 0 : i32
    return %c0_i32, %c0_i32_0 : i32, i32
  }
  func.func @transform_3(%arg0: i32) -> (i32, i32) {
    %c0_i32 = arith.constant 0 : i32
    %c0_i32_0 = arith.constant 0 : i32
    %c0_i32_1 = arith.constant 0 : i32
    return %c0_i32, %c0_i32_0 : i32, i32
  }
  func.func @transform_4(%arg0: i32) -> (i32, i32, i32) {
    %c0_i32 = arith.constant 0 : i32
    %c0_i32_0 = arith.constant 0 : i32
    %c0_i32_1 = arith.constant 0 : i32
    %c0_i32_2 = arith.constant 0 : i32
    return %c0_i32, %c0_i32_0, %c0_i32_1 : i32, i32, i32
  }
  func.func @transform_5(%arg0: i32) -> (i32, i32, i32) {
    %c0_i32 = arith.constant 0 : i32
    %c0_i32_0 = arith.constant 0 : i32
    %c0_i32_1 = arith.constant 0 : i32
    %c0_i32_2 = arith.constant 0 : i32
    return %c0_i32, %c0_i32_0, %c0_i32_1 : i32, i32, i32
  }
  func.func @transform_6(%arg0: i32) -> (i32, i32) {
    %c0_i32 = arith.constant 0 : i32
    %c0_i32_0 = arith.constant 0 : i32
    return %arg0, %c0_i32 : i32, i32
  }
}

</mosaic_0001>

<bundles_post_ra>
// kernel: tpu_custom_call.1
= control target key start
LH: loop header
LB: loop body
LE: loop exit
PB: predicated region body
PF: predicated region fallthrough
CT: control target
= control target key end

     0   :  { %11 = vsyncpa [#allocation3], 0  ;;  %s815_s0 = inlined_call_operand.hbm [shape: f32[8,40], index: 0, kind: input, shape index: {}]   ;;  %s816_s1 = inlined_call_operand.hbm [shape: f32[8,128], index: 1, kind: input, shape index: {}]   ;;  %s817_s2 = inlined_call_operand.hbm [shape: f32[40,640], index: 2, kind: input, shape index: {}]   ;;  %s818_s3 = inlined_call_operand.hbm [shape: f32[1,640], index: 3, kind: input, shape index: {}]   ;;  %s819_s4 = inlined_call_operand.hbm [shape: f32[5,128,128], index: 4, kind: input, shape index: {}]   ;;  %s820_s5 = inlined_call_operand.hbm [shape: f32[5,1,128], index: 5, kind: input, shape index: {}]   ;;  %s821_s6 = inlined_call_operand.hbm [shape: f32[8,128], index: 6, kind: output, shape index: {}]  }
   0x1   :  { %12 = vsyncpa [#allocation6], 0 }
   0x2   :  { %13 = vsyncpa [#allocation9], 0 }
   0x3   :  { %14 = vsyncpa [#allocation12], 0  ;;  %s32_s23 = sshll.u32 %s816_s1, 4  ;;  %s33_s23 = int_to_ptr.hbm [resolvable:$true] %s32_s23 }
   0x4   :  { %15 = vsyncpa [#allocation4], 0  ;;  %s741_s24 = smov [#allocation5]   ;;  %s56_s28 = sshll.u32 %s818_s3, 4  ;;  %s57_s28 = int_to_ptr.hbm [resolvable:$true] %s56_s28 }
   0x5   :  { %s34_s25 = sshll.u32 %s741_s24, 4  ;;  %s742_s29 = smov [#allocation8]   ;;  %s35_s25 = int_to_ptr.vmem [resolvable:$true] %s34_s25 }
   0x6   :  { %37 = dma.hbm_to_vmem [thread:$0]  %s33_s23, 128, %s35_s25, [#allocation6]  }
   0x7   :  { %s58_s30 = sshll.u32 %s742_s29, 4  ;;  %s21_s9 = sshll.u32 %s815_s0, 4  ;;  %s59_s30 = int_to_ptr.vmem [resolvable:$true] %s58_s30  ;;  %s22_s9 = int_to_ptr.hbm [resolvable:$true] %s21_s9 }
   0x8   :  { %61 = dma.hbm_to_vmem [thread:$0]  %s57_s28, 80, %s59_s30, [#allocation9]  }
   0x9   :  { %s42_s11 = sshll.u32 %s817_s2, 4  ;;  %s743_s12 = smov [#allocation2]   ;;  %s43_s11 = int_to_ptr.hbm [resolvable:$true] %s42_s11 }
   0xa   :  { %s23_s13 = sshll.u32 %s743_s12, 4  ;;  %s744_s3 = smov [#allocation7]   ;;  %s24_s13 = int_to_ptr.vmem [resolvable:$true] %s23_s13 }
   0xb   :  { %26 = dma.hbm_to_vmem [thread:$0]  %s22_s9, 128, %s24_s13, [#allocation3]  }
   0xc   :  { %s44_s14 = sshll.u32 %s744_s3, 4  ;;  %s745_s15 = smov 640   ;;  %s45_s14 = int_to_ptr.vmem [resolvable:$true] %s44_s14 }
   0xd   :  { %s746_s16 = smov 40   ;;  %s66_s18 = sshll.u32 %s819_s4, 4  ;;  %s67_s18 = int_to_ptr.hbm [resolvable:$true] %s66_s18 }
   0xe   :  { %50 = dma.hbm_to_vmem [thread:$0]  %s43_s11, 3200, %s45_s14, [#allocation6], %s745_s15, %s745_s15, %s746_s16  }
   0xf   :  { %s747_s19 = smov [#allocation10]   ;;  %s79_s22 = sshll.u32 %s820_s5, 4  ;;  %s80_s22 = int_to_ptr.hbm [resolvable:$true] %s79_s22 }
  0x10   :  { %s68_s20 = sshll.u32 %s747_s19, 4  ;;  %s748_s23 = smov 128   ;;  %s69_s20 = int_to_ptr.vmem [resolvable:$true] %s68_s20 }
  0x11   :  { %s749_s24 = smov 8   ;;  %s750_s25 = smov [#allocation11]  }
  0x12   :  { %74 = dma.hbm_to_vmem [thread:$0]  %s67_s18, 10240, %s69_s20, [#allocation9], %s748_s23, %s748_s23, %s749_s24  }
  0x13   :  { %s81_s26 = sshll.u32 %s750_s25, 4  ;;  %s751_s27 = smov 16   ;;  %s82_s26 = int_to_ptr.vmem [resolvable:$true] %s81_s26 }
  0x14   :  { %s752_s28 = smov 1  }
  0x15   :  { %87 = dma.hbm_to_vmem [thread:$0]  %s80_s22, 80, %s82_s26, [#allocation12], %s751_s27, %s751_s27, %s752_s28  }
  0x16   :  { %731 = dma.done.wait [#allocation3], 128  }
  0x17   :  { %732 = vsyncadd [#allocation3], 4294967168 }
  0x18   :  { %733 = dma.done.wait [#allocation6], 3328  }
  0x19   :  { %734 = vsyncadd [#allocation6], 4294963968 }
  0x1a   :  { %735 = dma.done.wait [#allocation9], 10320  }
  0x1b   :  { %736 = vsyncadd [#allocation9], 4294956976 }
  0x1c   :  { %737 = dma.done.wait [#allocation12], 80  }
  0x1d   :  { %738 = vsyncadd [#allocation12], 4294967216  ;;  %v134_v0 = vld [vmem:[#allocation7 + $0xa8] sm:$0xff]  ;;  %v129_v1 = vld [vmem:[#allocation7 + $0x80] sm:$0xff]  ;;  %vm150_vm0 = vcmask 326656   ;;  %s753_s4 = smov [#allocation13]  }
  0x1e   :  { %185 = vmatpush.msra.mxu2 %v134_v0  ;;  %v133_v2 = vld [vmem:[#allocation7 + $0xa0] sm:$0xff]  ;;  %v128_v3 = vld [vmem:[#allocation7 + $0x78] sm:$0xff]  ;;  %v123_v5 = vld [vmem:[#allocation7 + $0x50] sm:$0xff]  ;;  %s523_s5 = sshll.u32 %s753_s4, 4  ;;  %s525_s7 = sshll.u32 %s821_s6, 4  ;;  %s524_s5 = int_to_ptr.vmem [resolvable:$true] %s523_s5  ;;  %s526_s7 = int_to_ptr.hbm [resolvable:$true] %s525_s7 }
  0x1f   :  { %v124_v4 = vld [vmem:[#allocation7 + $0x58] sm:$0xff]  ;;  %165 = vmatpush.msra.mxu0 %v133_v2  ;;  %v119_v6 = vld [vmem:[#allocation7 + $0x30] sm:$0xff]  ;;  %v118_v7 = vld [vmem:[#allocation7 + $0x28] sm:$0xff] }
  0x20   :  { %186 = vmatpush.msra.mxu2 %v129_v1  ;;  %v136_v8 = vld [vmem:[#allocation7 + $0xb8] sm:$0xff]  ;;  %v131_v9 = vld [vmem:[#allocation7 + $0x90] sm:$0xff]  ;;  %v114_v10 = vld [vmem:[#allocation7 + $0x8] sm:$0xff] }
  0x21   :  { %166 = vmatpush.msra.mxu0 %v128_v3  ;;  %225 = vmatpush.msra.mxu3 %v136_v8  ;;  %v135_v11 = vld [vmem:[#allocation7 + $0xb0] sm:$0xff]  ;;  %v113_v12 = vld [vmem:[#allocation7] sm:$0xff]  ;;  %v130_v15 = vld [vmem:[#allocation7 + $0x88] sm:$0xff] }
  0x22   :  { %187 = vmatpush.msra.mxu2 %v124_v4  ;;  %v112_v13 = vld [vmem:[#allocation2] sm:$0xff]  ;;  %v277_v14 = vld [vmem:[#allocation10 + $0x78] sm:$0xff]  ;;  %v276_v18 = vld [vmem:[#allocation10 + $0x70] sm:$0xff] }
  0x23   :  { %167 = vmatpush.msra.mxu0 %v123_v5  ;;  %226 = vmatpush.msra.mxu3 %v131_v9  ;;  %v126_v16 = vld [vmem:[#allocation7 + $0x68] sm:$0xff]  ;;  %v137_v17 = vld [vmem:[#allocation7 + $0xc0] sm:$0xff]  ;;  %v132_v21 = vld [vmem:[#allocation7 + $0x98] sm:$0xff] }
  0x24   :  { %188 = vmatpush.msra.mxu2 %v119_v6  ;;  %282 = vmatpush.msra.mxu1 %v277_v14  ;;  %v125_v19 = vld [vmem:[#allocation7 + $0x60] sm:$0xff]  ;;  %v275_v22 = vld [vmem:[#allocation10 + $0x68] sm:$0xff]  ;;  %v274_v27 = vld [vmem:[#allocation10 + $0x60] sm:$0xff] }
  0x25   :  { %168 = vmatpush.msra.mxu0 %v118_v7  ;;  %v121_v20 = vld [vmem:[#allocation7 + $0x40] sm:$0xff]  ;;  %227 = vmatpush.msra.mxu3 %v126_v16  ;;  %v120_v23 = vld [vmem:[#allocation7 + $0x38] sm:$0xff]  ;;  %v127_v25 = vld [vmem:[#allocation7 + $0x70] sm:$0xff] }
  0x26   :  { %189 = vmatpush.msra.mxu2 %v114_v10  ;;  %v116_v24 = vld [vmem:[#allocation7 + $0x18] sm:$0xff]  ;;  %283 = vmatpush.msra.mxu1 %v276_v18  ;;  %v115_v26 = vld [vmem:[#allocation7 + $0x10] sm:$0xff]  ;;  %v122_v28 = vld [vmem:[#allocation7 + $0x48] sm:$0xff] }
  0x27   :  { %169 = vmatpush.msra.mxu0 %v113_v12  ;;  %539 = vmatmul.msk.f32.vlgmr.msra.gmra.mxu2 %vm150_vm0, %v112_v13  ;;  %v325_v29 = vld [vmem:[#allocation10 + $0xf8] sm:$0xff]  ;;  %v324_v33 = vld [vmem:[#allocation10 + $0xf0] sm:$0xff]  ;;  %v323_v35 = vld [vmem:[#allocation10 + $0xe8] sm:$0xff] }
  0x28   :  { %205 = vmatpush.msrb.mxu2 %v135_v11  ;;  %538 = vmatmul.msk.f32.vlgmr.msra.gmra.mxu0 %vm150_vm0, %v112_v13  ;;  %v273_v30 = vld [vmem:[#allocation10 + $0x58] sm:$0xff]  ;;  %v272_v34 = vld [vmem:[#allocation10 + $0x50] sm:$0xff]  ;;  %v271_v36 = vld [vmem:[#allocation10 + $0x48] sm:$0xff] }
  0x29   :  { %245 = vmatpush.msrb.mxu0 %v137_v17  ;;  %228 = vmatpush.msra.mxu3 %v121_v20  ;;  %v117_v31 = vld [vmem:[#allocation7 + $0x20] sm:$0xff]  ;;  %v372_v39 = vld [vmem:[#allocation10 + $0x168] sm:$0xff]  ;;  %v322_v40 = vld [vmem:[#allocation10 + $0xe0] sm:$0xff] }
  0x2a   :  { %206 = vmatpush.msrb.mxu2 %v130_v15  ;;  %284 = vmatpush.msra.mxu1 %v275_v22  ;;  %v374_v32 = vld [vmem:[#allocation10 + $0x178] sm:$0xff]  ;;  %v373_v37 = vld [vmem:[#allocation10 + $0x170] sm:$0xff]  ;;  %v270_v41 = vld [vmem:[#allocation10 + $0x40] sm:$0xff] }
  0x2b   :  { %246 = vmatpush.msrb.mxu0 %v132_v21  ;;  %229 = vmatpush.msra.mxu3 %v116_v24  ;;  %v423_v38 = vld [vmem:[#allocation10 + $0x1f8] sm:$0xff]  ;;  %v371_v42 = vld [vmem:[#allocation10 + $0x160] sm:$0xff]  ;;  %v320_v46 = vld [vmem:[#allocation10 + $0xd0] sm:$0xff] }
  0x2c   :  { %207 = vmatpush.msrb.mxu2 %v125_v19  ;;  %541 = vmatmul.msk.f32.vlgmr.msra.gmra.mxu3 %vm150_vm0, %v112_v13  ;;  %v321_v43 = vld [vmem:[#allocation10 + $0xd8] sm:$0xff]  ;;  %v268_v47 = vld [vmem:[#allocation10 + $0x30] sm:$0xff]  ;;  %v319_v49 = vld [vmem:[#allocation10 + $0xc8] sm:$0xff] }
  0x2d   :  { %247 = vmatpush.msrb.mxu0 %v127_v25  ;;  %285 = vmatpush.msra.mxu1 %v274_v27  ;;  %v269_v44 = vld [vmem:[#allocation10 + $0x38] sm:$0xff]  ;;  %v369_v48 = vld [vmem:[#allocation10 + $0x150] sm:$0xff]  ;;  %v267_v50 = vld [vmem:[#allocation10 + $0x28] sm:$0xff] }
  0x2e   :  { %208 = vmatpush.msrb.mxu2 %v120_v23  ;;  %380 = vmatpush.msrb.mxu3 %v374_v32  ;;  %v370_v45 = vld [vmem:[#allocation10 + $0x158] sm:$0xff]  ;;  %v368_v51 = vld [vmem:[#allocation10 + $0x148] sm:$0xff]  ;;  %v318_v52 = vld [vmem:[#allocation10 + $0xc0] sm:$0xff] }
  0x2f   :  { %248 = vmatpush.msrb.mxu0 %v122_v28  ;;  %286 = vmatpush.msra.mxu1 %v273_v30  ;;  %v266_v53 = vld [vmem:[#allocation10 + $0x20] sm:$0xff]  ;;  %v317_v55 = vld [vmem:[#allocation10 + $0xb8] sm:$0xff]  ;;  %v316_v57 = vld [vmem:[#allocation10 + $0xb0] sm:$0xff] }
  0x30   :  { %209 = vmatpush.msrb.mxu2 %v115_v26  ;;  %381 = vmatpush.msrb.mxu3 %v373_v37  ;;  %v367_v54 = vld [vmem:[#allocation10 + $0x140] sm:$0xff]  ;;  %v265_v56 = vld [vmem:[#allocation10 + $0x18] sm:$0xff]  ;;  %v264_v58 = vld [vmem:[#allocation10 + $0x10] sm:$0xff] }
  0x31   :  { %540 = vmatmul.msk.f32.vlgmr.msrb.gmra.mxu2 %vm150_vm0, %v112_v13  ;;  %249 = vmatpush.msrb.mxu0 %v117_v31  ;;  %v315_v59 = vld [vmem:[#allocation10 + $0xa8] sm:$0xff]  ;;  %v314_v61 = vld [vmem:[#allocation10 + $0xa0] sm:$0xff]  ;;  %v313_v63 = vld [vmem:[#allocation10 + $0x98] sm:$0xff] }
  0x32   :  { %331 = vmatpush.msra.mxu2 %v325_v29  ;;  %542 = vmatmul.msk.f32.vlgmr.msrb.gmra.mxu0 %vm150_vm0, %v112_v13  ;;  %v263_v60 = vld [vmem:[#allocation10 + $0x8] sm:$0xff]  ;;  %v262_v62 = vld [vmem:[#allocation10] sm:$0xff]  ;;  %v366_v0 = vld [vmem:[#allocation10 + $0x138] sm:$0xff] }
  0x33   :  { %287 = vmatpush.msra.mxu1 %v272_v34  ;;  %429 = vmatpush.msra.mxu0 %v423_v38  ;;  %v422_v1 = vld [vmem:[#allocation10 + $0x1f0] sm:$0xff]  ;;  %v472_v2 = vld [vmem:[#allocation10 + $0x278] sm:$0xff]  ;;  %v421_v5 = vld [vmem:[#allocation10 + $0x1e8] sm:$0xff] }
  0x34   :  { %332 = vmatpush.msra.mxu2 %v324_v33  ;;  %382 = vmatpush.msrb.mxu3 %v372_v39  ;;  %v312_v3 = vld [vmem:[#allocation10 + $0x90] sm:$0xff]  ;;  %v311_v7 = vld [vmem:[#allocation10 + $0x88] sm:$0xff]  ;;  %v420_v9 = vld [vmem:[#allocation10 + $0x1e0] sm:$0xff] }
  0x35   :  { %288 = vmatpush.msra.mxu1 %v271_v36  ;;  %430 = vmatpush.msra.mxu0 %v422_v1  ;;  %v365_v4 = vld [vmem:[#allocation10 + $0x130] sm:$0xff]  ;;  %v364_v8 = vld [vmem:[#allocation10 + $0x128] sm:$0xff]  ;;  %v310_v11 = vld [vmem:[#allocation10 + $0x80] sm:$0xff] }
  0x36   :  { %333 = vmatpush.msra.mxu2 %v323_v35  ;;  %383 = vmatpush.msrb.mxu3 %v371_v42  ;;  %v471_v6 = vld [vmem:[#allocation10 + $0x270] sm:$0xff]  ;;  %v470_v10 = vld [vmem:[#allocation10 + $0x268] sm:$0xff]  ;;  %v363_v12 = vld [vmem:[#allocation10 + $0x120] sm:$0xff] }
  0x37   :  { %289 = vmatpush.msra.mxu1 %v270_v41  ;;  %431 = vmatpush.msra.mxu0 %v421_v5  ;;  %v419_v13 = vld [vmem:[#allocation10 + $0x1d8] sm:$0xff]  ;;  %v469_v14 = vld [vmem:[#allocation10 + $0x260] sm:$0xff]  ;;  %v418_v16 = vld [vmem:[#allocation10 + $0x1d0] sm:$0xff] }
  0x38   :  { %334 = vmatpush.msra.mxu2 %v322_v40  ;;  %384 = vmatpush.msrb.mxu3 %v370_v45  ;;  %v362_v15 = vld [vmem:[#allocation10 + $0x118] sm:$0xff]  ;;  %v361_v18 = vld [vmem:[#allocation10 + $0x110] sm:$0xff]  ;;  %v417_v19 = vld [vmem:[#allocation10 + $0x1c8] sm:$0xff] }
  0x39   :  { %290 = vmatpush.msra.mxu1 %v269_v44  ;;  %432 = vmatpush.msra.mxu0 %v420_v9  ;;  %v468_v17 = vld [vmem:[#allocation10 + $0x258] sm:$0xff]  ;;  %v467_v20 = vld [vmem:[#allocation10 + $0x250] sm:$0xff]  ;;  %v360_v21 = vld [vmem:[#allocation10 + $0x108] sm:$0xff] }
  0x3a   :  { %335 = vmatpush.msra.mxu2 %v321_v43  ;;  %385 = vmatpush.msrb.mxu3 %v369_v48  ;;  %v416_v22 = vld [vmem:[#allocation10 + $0x1c0] sm:$0xff]  ;;  %v466_v23 = vld [vmem:[#allocation10 + $0x248] sm:$0xff]  ;;  %v415_v25 = vld [vmem:[#allocation10 + $0x1b8] sm:$0xff] }
  0x3b   :  { %291 = vmatpush.msra.mxu1 %v268_v47  ;;  %433 = vmatpush.msra.mxu0 %v419_v13  ;;  %v359_v24 = vld [vmem:[#allocation10 + $0x100] sm:$0xff]  ;;  %v414_v27 = vld [vmem:[#allocation10 + $0x1b0] sm:$0xff]  ;;  %v464_v28 = vld [vmem:[#allocation10 + $0x238] sm:$0xff] }
  0x3c   :  { %336 = vmatpush.msra.mxu2 %v320_v46  ;;  %386 = vmatpush.msrb.mxu3 %v368_v51  ;;  %v465_v26 = vld [vmem:[#allocation10 + $0x240] sm:$0xff]  ;;  %v413_v29 = vld [vmem:[#allocation10 + $0x1a8] sm:$0xff]  ;;  %v463_v30 = vld [vmem:[#allocation10 + $0x230] sm:$0xff] }
  0x3d   :  { %292 = vmatpush.msra.mxu1 %v267_v50  ;;  %434 = vmatpush.msra.mxu0 %v418_v16  ;;  %v412_v31 = vld [vmem:[#allocation10 + $0x1a0] sm:$0xff]  ;;  %v462_v32 = vld [vmem:[#allocation10 + $0x228] sm:$0xff]  ;;  %v411_v33 = vld [vmem:[#allocation10 + $0x198] sm:$0xff] }
  0x3e   :  { %337 = vmatpush.msra.mxu2 %v319_v49  ;;  %387 = vmatpush.msrb.mxu3 %v367_v54  ;;  %v461_v34 = vld [vmem:[#allocation10 + $0x220] sm:$0xff]  ;;  %v138_v35 = vld [vmem:[#allocation8] sm:$0x1f]  ;;  %v410_v36 = vld [vmem:[#allocation10 + $0x190] sm:$0xff] }
  0x3f   :  { %293 = vmatpush.msra.mxu1 %v266_v53  ;;  %435 = vmatpush.msra.mxu0 %v417_v19  ;;  %v460_v37 = vld [vmem:[#allocation10 + $0x218] sm:$0xff]  ;;  %v409_v38 = vld [vmem:[#allocation10 + $0x188] sm:$0xff]  ;;  %v459_v39 = vld [vmem:[#allocation10 + $0x210] sm:$0xff]  ;;  %v140_v40 = vperm.slane %v138_v35, 0  ;;  %v141_v47 = vperm.slane %v138_v35, 1  ;;  %v144_v50 = vperm.slane %v138_v35, 4 }
  0x40   :  { %338 = vmatpush.msra.mxu2 %v318_v52  ;;  %388 = vmatpush.msrb.mxu3 %v366_v0  ;;  %v408_v41 = vld [vmem:[#allocation10 + $0x180] sm:$0xff]  ;;  %v458_v42 = vld [vmem:[#allocation10 + $0x208] sm:$0xff]  ;;  %v143_v52 = vperm.slane %v138_v35, 3  ;;  %v142_v53 = vperm.slane %v138_v35, 2 }
  0x41   :  { %294 = vmatpush.msra.mxu1 %v265_v56  ;;  %436 = vmatpush.msra.mxu0 %v416_v22  ;;  %v457_v44 = vld [vmem:[#allocation10 + $0x200] sm:$0xff]  ;;  %v259_v1 = vld [vmem:[#allocation5] sm:$0xff] }
  0x42   :  { %339 = vmatpush.msra.mxu2 %v317_v55  ;;  %389 = vmatpush.msrb.mxu3 %v365_v4  ;;  %v560_v5 = vld [vmem:[#allocation11 + $0x4] ss:$0 sm:$0xff]  ;;  %v559_v16 = vld [vmem:[#allocation11 + $0x3] ss:$0 sm:$0xff] }
  0x43   :  { %295 = vmatpush.msra.mxu1 %v264_v58  ;;  %437 = vmatpush.msra.mxu0 %v415_v25 }
  0x44   :  { %340 = vmatpush.msra.mxu2 %v316_v57  ;;  %390 = vmatpush.msrb.mxu3 %v364_v8 }
  0x45   :  { %296 = vmatpush.msra.mxu1 %v263_v60  ;;  %438 = vmatpush.msra.mxu0 %v414_v27 }
  0x46   :  { %341 = vmatpush.msra.mxu2 %v315_v59  ;;  %391 = vmatpush.msrb.mxu3 %v363_v12 }
  0x47   :  { %297 = vmatpush.msra.mxu1 %v262_v62  ;;  %439 = vmatpush.msra.mxu0 %v413_v29 }
  0x48   :  { %342 = vmatpush.msra.mxu2 %v314_v61  ;;  %392 = vmatpush.msrb.mxu3 %v362_v15  ;;  %v558_v15 = vld [vmem:[#allocation11 + $0x2] ss:$0 sm:$0xff] }
  0x49   :  { %478 = vmatpush.msrb.mxu1 %v472_v2  ;;  %440 = vmatpush.msra.mxu0 %v412_v31 }
  0x4a   :  { %343 = vmatpush.msra.mxu2 %v313_v63  ;;  %393 = vmatpush.msrb.mxu3 %v361_v18  ;;  %v556_v63 = vld [vmem:[#allocation11] ss:$0 sm:$0xff] }
  0x4b   :  { %479 = vmatpush.msrb.mxu1 %v471_v6  ;;  %441 = vmatpush.msra.mxu0 %v411_v33  ;;  %v557_v6 = vld [vmem:[#allocation11 + $0x1] ss:$0 sm:$0xff] }
  0x4c   :  { %344 = vmatpush.msra.mxu2 %v312_v3  ;;  %394 = vmatpush.msrb.mxu3 %v360_v21 }
  0x4d   :  { %480 = vmatpush.msrb.mxu1 %v470_v10  ;;  %442 = vmatpush.msra.mxu0 %v410_v36 }
  0x4e   :  { %345 = vmatpush.msra.mxu2 %v311_v7  ;;  %395 = vmatpush.msrb.mxu3 %v359_v24 }
  0x4f   :  { %481 = vmatpush.msrb.mxu1 %v469_v14  ;;  %443 = vmatpush.msra.mxu0 %v409_v38 }
  0x50   :  { %346 = vmatpush.msra.mxu2 %v310_v11 }
  0x51   :  { %482 = vmatpush.msrb.mxu1 %v468_v17  ;;  %444 = vmatpush.msra.mxu0 %v408_v41 }
  0x53   :  { %483 = vmatpush.msrb.mxu1 %v467_v20 }
  0x55   :  { %484 = vmatpush.msrb.mxu1 %v466_v23 }
  0x57   :  { %485 = vmatpush.msrb.mxu1 %v465_v26  ;;  %v260_v26 = vlaneseq }
  0x59   :  { %486 = vmatpush.msrb.mxu1 %v464_v28  ;;  %v261_v27 = vand.u32 127, %v260_v26 }
  0x5b   :  { %487 = vmatpush.msrb.mxu1 %v463_v30  ;;  %vm306_vm1 = vcmp.eq.s32.totalorder %v261_v27, 0  ;;  %vm355_vm2 = vcmp.eq.s32.totalorder %v261_v27, 1  ;;  %vm404_vm3 = vcmp.eq.s32.totalorder %v261_v27, 2  ;;  %vm453_vm4 = vcmp.eq.s32.totalorder %v261_v27, 3 }
  0x5c   :  { %vm502_vm5 = vcmp.eq.s32.totalorder %v261_v27, 4 }
  0x5d   :  { %488 = vmatpush.msrb.mxu1 %v462_v32 }
  0x5f   :  { %489 = vmatpush.msrb.mxu1 %v461_v34 }
  0x61   :  { %490 = vmatpush.msrb.mxu1 %v460_v37 }
  0x63   :  { %491 = vmatpush.msrb.mxu1 %v459_v39 }
  0x65   :  { %492 = vmatpush.msrb.mxu1 %v458_v42 }
  0x67   :  { %493 = vmatpush.msrb.mxu1 %v457_v44 }
  0xa5   :  { %v171_v43 = vpop.f32.mrf.mxu0 }
  0xa6   :  { %v172_v45 = vadd.f32 %v171_v43, %v140_v40 }
  0xa8   :  { %v254_v46 = vmax.f32 %v172_v45, 0.0 }
  0xaa   :  { %298 = vmatmul.f32.vlgmr.msra.gmra.mxu1 %v254_v46  ;;  %v191_v48 = vpop.f32.mrf.mxu2 }
  0xab   :  { %v192_v49 = vadd.f32 %v191_v48, %v141_v47 }
  0xad   :  { %v255_v51 = vmax.f32 %v192_v49, 0.0 }
  0xaf   :  { %347 = vmatmul.f32.vlgmr.msra.gmra.mxu2 %v255_v51  ;;  %v251_v54 = vpop.f32.mrf.mxu0  ;;  %v231_v55 = vpop.f32.mrf.mxu3 }
  0xb0   :  { %v252_v56 = vadd.f32 %v251_v54, %v144_v50  ;;  %v232_v57 = vadd.f32 %v231_v55, %v143_v52 }
  0xb2   :  { %v258_v59 = vmax.f32 %v252_v56, 0.0  ;;  %v257_v61 = vmax.f32 %v232_v57, 0.0 }
  0xb4   :  { %v211_v58 = vpop.f32.mrf.mxu2  ;;  %494 = vmatmul.f32.vlgmr.msrb.gmra.mxu1 %v258_v59  ;;  %445 = vmatmul.f32.vlgmr.msra.gmra.mxu0 %v257_v61 }
  0xb5   :  { %v212_v60 = vadd.f32 %v211_v58, %v142_v53 }
  0xb7   :  { %v256_v62 = vmax.f32 %v212_v60, 0.0 }
  0xb9   :  { %396 = vmatmul.f32.vlgmr.msrb.gmra.mxu3 %v256_v62 }
 0x127   :  { %v299_v0 = vpop.f32.mrf.mxu1 }
 0x128   :  { %v300_v2 = vadd.f32 %v556_v63, %v299_v0 }
 0x12a   :  { %v302_v3 = vsub.f32 %v259_v1, %v300_v2 }
 0x12c   :  { %v303_v4 = vmul.f32 %v302_v3, %v302_v3 }
 0x12e   :  { %304 = vadd.xlane.f32.xlu0 %v303_v4 }
 0x131   :  { %v495_v7 = vpop.f32.mrf.mxu1  ;;  %v446_v18 = vpop.f32.mrf.mxu0 }
 0x132   :  { %v348_v8 = vpop.f32.mrf.mxu2  ;;  %v496_v9 = vadd.f32 %v560_v5, %v495_v7  ;;  %v447_v21 = vadd.f32 %v559_v16, %v446_v18 }
 0x133   :  { %v349_v10 = vadd.f32 %v557_v6, %v348_v8 }
 0x134   :  { %v498_v11 = vsub.f32 %v259_v1, %v496_v9  ;;  %v449_v23 = vsub.f32 %v259_v1, %v447_v21 }
 0x135   :  { %v351_v12 = vsub.f32 %v259_v1, %v349_v10 }
 0x136   :  { %v499_v13 = vmul.f32 %v498_v11, %v498_v11  ;;  %v450_v24 = vmul.f32 %v449_v23, %v449_v23 }
 0x137   :  { %v352_v14 = vmul.f32 %v351_v12, %v351_v12 }
 0x138   :  { %500 = vadd.xlane.f32.xlu2 %v499_v13 }
 0x139   :  { %353 = vadd.xlane.f32.xlu0 %v352_v14 }
 0x13c   :  { %v397_v17 = vpop.f32.mrf.mxu3 }
 0x13d   :  { %v398_v19 = vadd.f32 %v558_v15, %v397_v17 }
 0x13f   :  { %v400_v20 = vsub.f32 %v259_v1, %v398_v19 }
 0x141   :  { %v401_v22 = vmul.f32 %v400_v20, %v400_v20 }
 0x143   :  { %402 = vadd.xlane.f32.xlu1 %v401_v22 }
 0x14b   :  { %451 = vadd.xlane.f32.xlu1 %v450_v24 }
 0x1a1   :  { %v305_v25 = vpop.xlane.xlu0 %304 }
 0x1a2   :  { %v307_v30 = vsel %vm306_vm1, %v305_v25, 0.0 }
 0x1ab   :  { %v501_v34 = vpop.xlane.xlu2 %500 }
 0x1ac   :  { %v354_v28 = vpop.xlane.xlu0 %353  ;;  %v503_v38 = vsel %vm502_vm5, %v501_v34, 0.0 }
 0x1ad   :  { %v356_v31 = vsel %vm355_vm2, %v354_v28, 0.0 }
 0x1ae   :  { %v357_v33 = vadd.f32 %v356_v31, %v307_v30 }
 0x1b6   :  { %v403_v29 = vpop.xlane.xlu1 %402 }
 0x1b7   :  { %v405_v32 = vsel %vm404_vm3, %v403_v29, 0.0 }
 0x1b8   :  { %v406_v35 = vadd.f32 %v405_v32, %v357_v33 }
 0x1be   :  { %v452_v36 = vpop.xlane.xlu1 %451 }
 0x1bf   :  { %v454_v37 = vsel %vm453_vm4, %v452_v36, 0.0 }
 0x1c0   :  { %v455_v39 = vadd.f32 %v454_v37, %v406_v35 }
 0x1c2   :  { %v504_v40 = vadd.f32 %v503_v38, %v455_v39 }
 0x1c4   :  { %561 = vrsqrt.f32 %v504_v40  ;;  %vm512_vm6 = vcmp.eq.f32.partialorder %v504_v40, inf  ;;  %v515_v48 = vand.u32 2147483648, %v504_v40  ;;  %vm514_vm7 = vcmp.eq.f32.partialorder %v504_v40, 0.0 }
 0x1ca   :  { %v562_v41 = vpop.eup %561 }
 0x1cb   :  { %v506_v42 = vmul.f32 %v562_v41, %v504_v40 }
 0x1cd   :  { %v507_v43 = vmul.f32 %v562_v41, %v506_v42 }
 0x1cf   :  { %v508_v44 = vmul.f32 0.5, %v507_v43 }
 0x1d1   :  { %v509_v45 = vsub.f32 1.5, %v508_v44 }
 0x1d3   :  { %v510_v46 = vmul.f32 %v562_v41, %v509_v45 }
 0x1d5   :  { %v511_v47 = vmul.f32 %v510_v46, %v504_v40 }
 0x1d7   :  { %v513_v49 = vsel %vm512_vm6, %v504_v40, %v511_v47 }
 0x1d8   :  { %v516_v50 = vsel %vm514_vm7, %v515_v48, %v513_v49 }
 0x1d9   :  { %517 = vst [vmem:[#allocation13] sm:$0xff] %v516_v50 }
 0x1da   :  { %528 = dma.vmem_to_hbm [thread:$0]  %s524_s5, 128, %s526_s7, [#allocation4]  }
 0x1db   :  { %739 = dma.done.wait [#allocation4], 128  }
 0x1dc   :  { %740 = vsyncadd [#allocation4], 4294967168 }
 0x1dd   :  { %533 = vsyncpa [#allocation3], 1 }
 0x1de   :  { %534 = vsyncpa [#allocation6], 1 }
 0x1df   :  { %535 = vsyncpa [#allocation9], 1 }
 0x1e0   :  { %536 = vsyncpa [#allocation12], 1 }
 0x1e1   :  { %537 = vsyncpa [#allocation4], 1 }

// kernel: tpu_custom_call.1
= control target key start
LH: loop header
LB: loop body
LE: loop exit
PB: predicated region body
PF: predicated region fallthrough
CT: control target
= control target key end

     0   :  { %11 = vsyncpa [#allocation3], 0  ;;  %s815_s0 = inlined_call_operand.hbm [shape: f32[8,40], index: 0, kind: input, shape index: {}]   ;;  %s816_s1 = inlined_call_operand.hbm [shape: f32[8,128], index: 1, kind: input, shape index: {}]   ;;  %s817_s2 = inlined_call_operand.hbm [shape: f32[40,640], index: 2, kind: input, shape index: {}]   ;;  %s818_s3 = inlined_call_operand.hbm [shape: f32[1,640], index: 3, kind: input, shape index: {}]   ;;  %s819_s4 = inlined_call_operand.hbm [shape: f32[5,128,128], index: 4, kind: input, shape index: {}]   ;;  %s820_s5 = inlined_call_operand.hbm [shape: f32[5,1,128], index: 5, kind: input, shape index: {}]   ;;  %s821_s6 = inlined_call_operand.hbm [shape: f32[8,128], index: 6, kind: output, shape index: {}]  }
   0x1   :  { %12 = vsyncpa [#allocation6], 0 }
   0x2   :  { %13 = vsyncpa [#allocation9], 0 }
   0x3   :  { %14 = vsyncpa [#allocation12], 0  ;;  %s32_s23 = sshll.u32 %s816_s1, 4  ;;  %s33_s23 = int_to_ptr.hbm [resolvable:$true] %s32_s23 }
   0x4   :  { %15 = vsyncpa [#allocation4], 0  ;;  %s741_s24 = smov [#allocation5]   ;;  %s56_s28 = sshll.u32 %s818_s3, 4  ;;  %s57_s28 = int_to_ptr.hbm [resolvable:$true] %s56_s28 }
   0x5   :  { %s34_s25 = sshll.u32 %s741_s24, 4  ;;  %s742_s29 = smov [#allocation8]   ;;  %s35_s25 = int_to_ptr.vmem [resolvable:$true] %s34_s25 }
   0x6   :  { %37 = dma.hbm_to_vmem [thread:$0]  %s33_s23, 128, %s35_s25, [#allocation6]  }
   0x7   :  { %s58_s30 = sshll.u32 %s742_s29, 4  ;;  %s21_s9 = sshll.u32 %s815_s0, 4  ;;  %s59_s30 = int_to_ptr.vmem [resolvable:$true] %s58_s30  ;;  %s22_s9 = int_to_ptr.hbm [resolvable:$true] %s21_s9 }
   0x8   :  { %61 = dma.hbm_to_vmem [thread:$0]  %s57_s28, 80, %s59_s30, [#allocation9]  }
   0x9   :  { %s42_s11 = sshll.u32 %s817_s2, 4  ;;  %s743_s12 = smov [#allocation2]   ;;  %s43_s11 = int_to_ptr.hbm [resolvable:$true] %s42_s11 }
   0xa   :  { %s23_s13 = sshll.u32 %s743_s12, 4  ;;  %s744_s3 = smov [#allocation7]   ;;  %s24_s13 = int_to_ptr.vmem [resolvable:$true] %s23_s13 }
   0xb   :  { %26 = dma.hbm_to_vmem [thread:$0]  %s22_s9, 128, %s24_s13, [#allocation3]  }
   0xc   :  { %s44_s14 = sshll.u32 %s744_s3, 4  ;;  %s745_s15 = smov 640   ;;  %s45_s14 = int_to_ptr.vmem [resolvable:$true] %s44_s14 }
   0xd   :  { %s746_s16 = smov 40   ;;  %s66_s18 = sshll.u32 %s819_s4, 4  ;;  %s67_s18 = int_to_ptr.hbm [resolvable:$true] %s66_s18 }
   0xe   :  { %50 = dma.hbm_to_vmem [thread:$0]  %s43_s11, 3200, %s45_s14, [#allocation6], %s745_s15, %s745_s15, %s746_s16  }
   0xf   :  { %s747_s19 = smov [#allocation10]   ;;  %s79_s22 = sshll.u32 %s820_s5, 4  ;;  %s80_s22 = int_to_ptr.hbm [resolvable:$true] %s79_s22 }
  0x10   :  { %s68_s20 = sshll.u32 %s747_s19, 4  ;;  %s748_s23 = smov 128   ;;  %s69_s20 = int_to_ptr.vmem [resolvable:$true] %s68_s20 }
  0x11   :  { %s749_s24 = smov 8   ;;  %s750_s25 = smov [#allocation11]  }
  0x12   :  { %74 = dma.hbm_to_vmem [thread:$0]  %s67_s18, 10240, %s69_s20, [#allocation9], %s748_s23, %s748_s23, %s749_s24  }
  0x13   :  { %s81_s26 = sshll.u32 %s750_s25, 4  ;;  %s751_s27 = smov 16   ;;  %s82_s26 = int_to_ptr.vmem [resolvable:$true] %s81_s26 }
  0x14   :  { %s752_s28 = smov 1  }
  0x15   :  { %87 = dma.hbm_to_vmem [thread:$0]  %s80_s22, 80, %s82_s26, [#allocation12], %s751_s27, %s751_s27, %s752_s28  }
  0x16   :  { %731 = dma.done.wait [#allocation3], 128  }
  0x17   :  { %732 = vsyncadd [#allocation3], 4294967168 }
  0x18   :  { %733 = dma.done.wait [#allocation6], 3328  }
  0x19   :  { %734 = vsyncadd [#allocation6], 4294963968 }
  0x1a   :  { %735 = dma.done.wait [#allocation9], 10320  }
  0x1b   :  { %736 = vsyncadd [#allocation9], 4294956976 }
  0x1c   :  { %737 = dma.done.wait [#allocation12], 80  }
  0x1d   :  { %738 = vsyncadd [#allocation12], 4294967216  ;;  %v134_v0 = vld [vmem:[#allocation7 + $0xa8] sm:$0xff]  ;;  %v129_v1 = vld [vmem:[#allocation7 + $0x80] sm:$0xff]  ;;  %vm150_vm0 = vcmask 326656   ;;  %s753_s4 = smov [#allocation13]  }
  0x1e   :  { %185 = vmatpush.msra.mxu2 %v134_v0  ;;  %v133_v2 = vld [vmem:[#allocation7 + $0xa0] sm:$0xff]  ;;  %v128_v3 = vld [vmem:[#allocation7 + $0x78] sm:$0xff]  ;;  %v123_v5 = vld [vmem:[#allocation7 + $0x50] sm:$0xff]  ;;  %s523_s5 = sshll.u32 %s753_s4, 4  ;;  %s525_s7 = sshll.u32 %s821_s6, 4  ;;  %s524_s5 = int_to_ptr.vmem [resolvable:$true] %s523_s5  ;;  %s526_s7 = int_to_ptr.hbm [resolvable:$true] %s525_s7 }
  0x1f   :  { %v124_v4 = vld [vmem:[#allocation7 + $0x58] sm:$0xff]  ;;  %165 = vmatpush.msra.mxu0 %v133_v2  ;;  %v119_v6 = vld [vmem:[#allocation7 + $0x30] sm:$0xff]  ;;  %v118_v7 = vld [vmem:[#allocation7 + $0x28] sm:$0xff] }
  0x20   :  { %186 = vmatpush.msra.mxu2 %v129_v1  ;;  %v136_v8 = vld [vmem:[#allocation7 + $0xb8] sm:$0xff]  ;;  %v131_v9 = vld [vmem:[#allocation7 + $0x90] sm:$0xff]  ;;  %v114_v10 = vld [vmem:[#allocation7 + $0x8] sm:$0xff] }
  0x21   :  { %166 = vmatpush.msra.mxu0 %v128_v3  ;;  %225 = vmatpush.msra.mxu3 %v136_v8  ;;  %v135_v11 = vld [vmem:[#allocation7 + $0xb0] sm:$0xff]  ;;  %v113_v12 = vld [vmem:[#allocation7] sm:$0xff]  ;;  %v130_v15 = vld [vmem:[#allocation7 + $0x88] sm:$0xff] }
  0x22   :  { %187 = vmatpush.msra.mxu2 %v124_v4  ;;  %v112_v13 = vld [vmem:[#allocation2] sm:$0xff]  ;;  %v277_v14 = vld [vmem:[#allocation10 + $0x78] sm:$0xff]  ;;  %v276_v18 = vld [vmem:[#allocation10 + $0x70] sm:$0xff] }
  0x23   :  { %167 = vmatpush.msra.mxu0 %v123_v5  ;;  %226 = vmatpush.msra.mxu3 %v131_v9  ;;  %v126_v16 = vld [vmem:[#allocation7 + $0x68] sm:$0xff]  ;;  %v137_v17 = vld [vmem:[#allocation7 + $0xc0] sm:$0xff]  ;;  %v132_v21 = vld [vmem:[#allocation7 + $0x98] sm:$0xff] }
  0x24   :  { %188 = vmatpush.msra.mxu2 %v119_v6  ;;  %282 = vmatpush.msra.mxu1 %v277_v14  ;;  %v125_v19 = vld [vmem:[#allocation7 + $0x60] sm:$0xff]  ;;  %v275_v22 = vld [vmem:[#allocation10 + $0x68] sm:$0xff]  ;;  %v274_v27 = vld [vmem:[#allocation10 + $0x60] sm:$0xff] }
  0x25   :  { %168 = vmatpush.msra.mxu0 %v118_v7  ;;  %v121_v20 = vld [vmem:[#allocation7 + $0x40] sm:$0xff]  ;;  %227 = vmatpush.msra.mxu3 %v126_v16  ;;  %v120_v23 = vld [vmem:[#allocation7 + $0x38] sm:$0xff]  ;;  %v127_v25 = vld [vmem:[#allocation7 + $0x70] sm:$0xff] }
  0x26   :  { %189 = vmatpush.msra.mxu2 %v114_v10  ;;  %v116_v24 = vld [vmem:[#allocation7 + $0x18] sm:$0xff]  ;;  %283 = vmatpush.msra.mxu1 %v276_v18  ;;  %v115_v26 = vld [vmem:[#allocation7 + $0x10] sm:$0xff]  ;;  %v122_v28 = vld [vmem:[#allocation7 + $0x48] sm:$0xff] }
  0x27   :  { %169 = vmatpush.msra.mxu0 %v113_v12  ;;  %539 = vmatmul.msk.f32.vlgmr.msra.gmra.mxu2 %vm150_vm0, %v112_v13  ;;  %v325_v29 = vld [vmem:[#allocation10 + $0xf8] sm:$0xff]  ;;  %v324_v33 = vld [vmem:[#allocation10 + $0xf0] sm:$0xff]  ;;  %v323_v35 = vld [vmem:[#allocation10 + $0xe8] sm:$0xff] }
  0x28   :  { %205 = vmatpush.msrb.mxu2 %v135_v11  ;;  %538 = vmatmul.msk.f32.vlgmr.msra.gmra.mxu0 %vm150_vm0, %v112_v13  ;;  %v273_v30 = vld [vmem:[#allocation10 + $0x58] sm:$0xff]  ;;  %v272_v34 = vld [vmem:[#allocation10 + $0x50] sm:$0xff]  ;;  %v271_v36 = vld [vmem:[#allocation10 + $0x48] sm:$0xff] }
  0x29   :  { %245 = vmatpush.msrb.mxu0 %v137_v17  ;;  %228 = vmatpush.msra.mxu3 %v121_v20  ;;  %v117_v31 = vld [vmem:[#allocation7 + $0x20] sm:$0xff]  ;;  %v372_v39 = vld [vmem:[#allocation10 + $0x168] sm:$0xff]  ;;  %v322_v40 = vld [vmem:[#allocation10 + $0xe0] sm:$0xff] }
  0x2a   :  { %206 = vmatpush.msrb.mxu2 %v130_v15  ;;  %284 = vmatpush.msra.mxu1 %v275_v22  ;;  %v374_v32 = vld [vmem:[#allocation10 + $0x178] sm:$0xff]  ;;  %v373_v37 = vld [vmem:[#allocation10 + $0x170] sm:$0xff]  ;;  %v270_v41 = vld [vmem:[#allocation10 + $0x40] sm:$0xff] }
  0x2b   :  { %246 = vmatpush.msrb.mxu0 %v132_v21  ;;  %229 = vmatpush.msra.mxu3 %v116_v24  ;;  %v423_v38 = vld [vmem:[#allocation10 + $0x1f8] sm:$0xff]  ;;  %v371_v42 = vld [vmem:[#allocation10 + $0x160] sm:$0xff]  ;;  %v320_v46 = vld [vmem:[#allocation10 + $0xd0] sm:$0xff] }
  0x2c   :  { %207 = vmatpush.msrb.mxu2 %v125_v19  ;;  %541 = vmatmul.msk.f32.vlgmr.msra.gmra.mxu3 %vm150_vm0, %v112_v13  ;;  %v321_v43 = vld [vmem:[#allocation10 + $0xd8] sm:$0xff]  ;;  %v268_v47 = vld [vmem:[#allocation10 + $0x30] sm:$0xff]  ;;  %v319_v49 = vld [vmem:[#allocation10 + $0xc8] sm:$0xff] }
  0x2d   :  { %247 = vmatpush.msrb.mxu0 %v127_v25  ;;  %285 = vmatpush.msra.mxu1 %v274_v27  ;;  %v269_v44 = vld [vmem:[#allocation10 + $0x38] sm:$0xff]  ;;  %v369_v48 = vld [vmem:[#allocation10 + $0x150] sm:$0xff]  ;;  %v267_v50 = vld [vmem:[#allocation10 + $0x28] sm:$0xff] }
  0x2e   :  { %208 = vmatpush.msrb.mxu2 %v120_v23  ;;  %380 = vmatpush.msrb.mxu3 %v374_v32  ;;  %v370_v45 = vld [vmem:[#allocation10 + $0x158] sm:$0xff]  ;;  %v368_v51 = vld [vmem:[#allocation10 + $0x148] sm:$0xff]  ;;  %v318_v52 = vld [vmem:[#allocation10 + $0xc0] sm:$0xff] }
  0x2f   :  { %248 = vmatpush.msrb.mxu0 %v122_v28  ;;  %286 = vmatpush.msra.mxu1 %v273_v30  ;;  %v266_v53 = vld [vmem:[#allocation10 + $0x20] sm:$0xff]  ;;  %v317_v55 = vld [vmem:[#allocation10 + $0xb8] sm:$0xff]  ;;  %v316_v57 = vld [vmem:[#allocation10 + $0xb0] sm:$0xff] }
  0x30   :  { %209 = vmatpush.msrb.mxu2 %v115_v26  ;;  %381 = vmatpush.msrb.mxu3 %v373_v37  ;;  %v367_v54 = vld [vmem:[#allocation10 + $0x140] sm:$0xff]  ;;  %v265_v56 = vld [vmem:[#allocation10 + $0x18] sm:$0xff]  ;;  %v264_v58 = vld [vmem:[#allocation10 + $0x10] sm:$0xff] }
  0x31   :  { %540 = vmatmul.msk.f32.vlgmr.msrb.gmra.mxu2 %vm150_vm0, %v112_v13  ;;  %249 = vmatpush.msrb.mxu0 %v117_v31  ;;  %v315_v59 = vld [vmem:[#allocation10 + $0xa8] sm:$0xff]  ;;  %v314_v61 = vld [vmem:[#allocation10 + $0xa0] sm:$0xff]  ;;  %v313_v63 = vld [vmem:[#allocation10 + $0x98] sm:$0xff] }
  0x32   :  { %331 = vmatpush.msra.mxu2 %v325_v29  ;;  %542 = vmatmul.msk.f32.vlgmr.msrb.gmra.mxu0 %vm150_vm0, %v112_v13  ;;  %v263_v60 = vld [vmem:[#allocation10 + $0x8] sm:$0xff]  ;;  %v262_v62 = vld [vmem:[#allocation10] sm:$0xff]  ;;  %v366_v0 = vld [vmem:[#allocation10 + $0x138] sm:$0xff] }
  0x33   :  { %287 = vmatpush.msra.mxu1 %v272_v34  ;;  %429 = vmatpush.msra.mxu0 %v423_v38  ;;  %v422_v1 = vld [vmem:[#allocation10 + $0x1f0] sm:$0xff]  ;;  %v472_v2 = vld [vmem:[#allocation10 + $0x278] sm:$0xff]  ;;  %v421_v5 = vld [vmem:[#allocation10 + $0x1e8] sm:$0xff] }
  0x34   :  { %332 = vmatpush.msra.mxu2 %v324_v33  ;;  %382 = vmatpush.msrb.mxu3 %v372_v39  ;;  %v312_v3 = vld [vmem:[#allocation10 + $0x90] sm:$0xff]  ;;  %v311_v7 = vld [vmem:[#allocation10 + $0x88] sm:$0xff]  ;;  %v420_v9 = vld [vmem:[#allocation10 + $0x1e0] sm:$0xff] }
  0x35   :  { %288 = vmatpush.msra.mxu1 %v271_v36  ;;  %430 = vmatpush.msra.mxu0 %v422_v1  ;;  %v365_v4 = vld [vmem:[#allocation10 + $0x130] sm:$0xff]  ;;  %v364_v8 = vld [vmem:[#allocation10 + $0x128] sm:$0xff]  ;;  %v310_v11 = vld [vmem:[#allocation10 + $0x80] sm:$0xff] }
  0x36   :  { %333 = vmatpush.msra.mxu2 %v323_v35  ;;  %383 = vmatpush.msrb.mxu3 %v371_v42  ;;  %v471_v6 = vld [vmem:[#allocation10 + $0x270] sm:$0xff]  ;;  %v470_v10 = vld [vmem:[#allocation10 + $0x268] sm:$0xff]  ;;  %v363_v12 = vld [vmem:[#allocation10 + $0x120] sm:$0xff] }
  0x37   :  { %289 = vmatpush.msra.mxu1 %v270_v41  ;;  %431 = vmatpush.msra.mxu0 %v421_v5  ;;  %v419_v13 = vld [vmem:[#allocation10 + $0x1d8] sm:$0xff]  ;;  %v469_v14 = vld [vmem:[#allocation10 + $0x260] sm:$0xff]  ;;  %v418_v16 = vld [vmem:[#allocation10 + $0x1d0] sm:$0xff] }
  0x38   :  { %334 = vmatpush.msra.mxu2 %v322_v40  ;;  %384 = vmatpush.msrb.mxu3 %v370_v45  ;;  %v362_v15 = vld [vmem:[#allocation10 + $0x118] sm:$0xff]  ;;  %v361_v18 = vld [vmem:[#allocation10 + $0x110] sm:$0xff]  ;;  %v417_v19 = vld [vmem:[#allocation10 + $0x1c8] sm:$0xff] }
  0x39   :  { %290 = vmatpush.msra.mxu1 %v269_v44  ;;  %432 = vmatpush.msra.mxu0 %v420_v9  ;;  %v468_v17 = vld [vmem:[#allocation10 + $0x258] sm:$0xff]  ;;  %v467_v20 = vld [vmem:[#allocation10 + $0x250] sm:$0xff]  ;;  %v360_v21 = vld [vmem:[#allocation10 + $0x108] sm:$0xff] }
  0x3a   :  { %335 = vmatpush.msra.mxu2 %v321_v43  ;;  %385 = vmatpush.msrb.mxu3 %v369_v48  ;;  %v416_v22 = vld [vmem:[#allocation10 + $0x1c0] sm:$0xff]  ;;  %v466_v23 = vld [vmem:[#allocation10 + $0x248] sm:$0xff]  ;;  %v415_v25 = vld [vmem:[#allocation10 + $0x1b8] sm:$0xff] }
  0x3b   :  { %291 = vmatpush.msra.mxu1 %v268_v47  ;;  %433 = vmatpush.msra.mxu0 %v419_v13  ;;  %v359_v24 = vld [vmem:[#allocation10 + $0x100] sm:$0xff]  ;;  %v414_v27 = vld [vmem:[#allocation10 + $0x1b0] sm:$0xff]  ;;  %v464_v28 = vld [vmem:[#allocation10 + $0x238] sm:$0xff] }
  0x3c   :  { %336 = vmatpush.msra.mxu2 %v320_v46  ;;  %386 = vmatpush.msrb.mxu3 %v368_v51  ;;  %v465_v26 = vld [vmem:[#allocation10 + $0x240] sm:$0xff]  ;;  %v413_v29 = vld [vmem:[#allocation10 + $0x1a8] sm:$0xff]  ;;  %v463_v30 = vld [vmem:[#allocation10 + $0x230] sm:$0xff] }
  0x3d   :  { %292 = vmatpush.msra.mxu1 %v267_v50  ;;  %434 = vmatpush.msra.mxu0 %v418_v16  ;;  %v412_v31 = vld [vmem:[#allocation10 + $0x1a0] sm:$0xff]  ;;  %v462_v32 = vld [vmem:[#allocation10 + $0x228] sm:$0xff]  ;;  %v411_v33 = vld [vmem:[#allocation10 + $0x198] sm:$0xff] }
  0x3e   :  { %337 = vmatpush.msra.mxu2 %v319_v49  ;;  %387 = vmatpush.msrb.mxu3 %v367_v54  ;;  %v461_v34 = vld [vmem:[#allocation10 + $0x220] sm:$0xff]  ;;  %v138_v35 = vld [vmem:[#allocation8] sm:$0x1f]  ;;  %v410_v36 = vld [vmem:[#allocation10 + $0x190] sm:$0xff] }
  0x3f   :  { %293 = vmatpush.msra.mxu1 %v266_v53  ;;  %435 = vmatpush.msra.mxu0 %v417_v19  ;;  %v460_v37 = vld [vmem:[#allocation10 + $0x218] sm:$0xff]  ;;  %v409_v38 = vld [vmem:[#allocation10 + $0x188] sm:$0xff]  ;;  %v459_v39 = vld [vmem:[#allocation10 + $0x210] sm:$0xff]  ;;  %v140_v40 = vperm.slane %v138_v35, 0  ;;  %v141_v47 = vperm.slane %v138_v35, 1  ;;  %v144_v50 = vperm.slane %v138_v35, 4 }
  0x40   :  { %338 = vmatpush.msra.mxu2 %v318_v52  ;;  %388 = vmatpush.msrb.mxu3 %v366_v0  ;;  %v408_v41 = vld [vmem:[#allocation10 + $0x180] sm:$0xff]  ;;  %v458_v42 = vld [vmem:[#allocation10 + $0x208] sm:$0xff]  ;;  %v143_v52 = vperm.slane %v138_v35, 3  ;;  %v142_v53 = vperm.slane %v138_v35, 2 }
  0x41   :  { %294 = vmatpush.msra.mxu1 %v265_v56  ;;  %436 = vmatpush.msra.mxu0 %v416_v22  ;;  %v457_v44 = vld [vmem:[#allocation10 + $0x200] sm:$0xff]  ;;  %v259_v1 = vld [vmem:[#allocation5] sm:$0xff] }
  0x42   :  { %339 = vmatpush.msra.mxu2 %v317_v55  ;;  %389 = vmatpush.msrb.mxu3 %v365_v4  ;;  %v560_v5 = vld [vmem:[#allocation11 + $0x4] ss:$0 sm:$0xff]  ;;  %v559_v16 = vld [vmem:[#allocation11 + $0x3] ss:$0 sm:$0xff] }
  0x43   :  { %295 = vmatpush.msra.mxu1 %v264_v58  ;;  %437 = vmatpush.msra.mxu0 %v415_v25 }
  0x44   :  { %340 = vmatpush.msra.mxu2 %v316_v57  ;;  %390 = vmatpush.msrb.mxu3 %v364_v8 }
  0x45   :  { %296 = vmatpush.msra.mxu1 %v263_v60  ;;  %438 = vmatpush.msra.mxu0 %v414_v27 }
  0x46   :  { %341 = vmatpush.msra.mxu2 %v315_v59  ;;  %391 = vmatpush.msrb.mxu3 %v363_v12 }
  0x47   :  { %297 = vmatpush.msra.mxu1 %v262_v62  ;;  %439 = vmatpush.msra.mxu0 %v413_v29 }
  0x48   :  { %342 = vmatpush.msra.mxu2 %v314_v61  ;;  %392 = vmatpush.msrb.mxu3 %v362_v15  ;;  %v558_v15 = vld [vmem:[#allocation11 + $0x2] ss:$0 sm:$0xff] }
  0x49   :  { %478 = vmatpush.msrb.mxu1 %v472_v2  ;;  %440 = vmatpush.msra.mxu0 %v412_v31 }
  0x4a   :  { %343 = vmatpush.msra.mxu2 %v313_v63  ;;  %393 = vmatpush.msrb.mxu3 %v361_v18  ;;  %v556_v63 = vld [vmem:[#allocation11] ss:$0 sm:$0xff] }
  0x4b   :  { %479 = vmatpush.msrb.mxu1 %v471_v6  ;;  %441 = vmatpush.msra.mxu0 %v411_v33  ;;  %v557_v6 = vld [vmem:[#allocation11 + $0x1] ss:$0 sm:$0xff] }
  0x4c   :  { %344 = vmatpush.msra.mxu2 %v312_v3  ;;  %394 = vmatpush.msrb.mxu3 %v360_v21 }
  0x4d   :  { %480 = vmatpush.msrb.mxu1 %v470_v10  ;;  %442 = vmatpush.msra.mxu0 %v410_v36 }
  0x4e   :  { %345 = vmatpush.msra.mxu2 %v311_v7  ;;  %395 = vmatpush.msrb.mxu3 %v359_v24 }
  0x4f   :  { %481 = vmatpush.msrb.mxu1 %v469_v14  ;;  %443 = vmatpush.msra.mxu0 %v409_v38 }
  0x50   :  { %346 = vmatpush.msra.mxu2 %v310_v11 }
  0x51   :  { %482 = vmatpush.msrb.mxu1 %v468_v17  ;;  %444 = vmatpush.msra.mxu0 %v408_v41 }
  0x53   :  { %483 = vmatpush.msrb.mxu1 %v467_v20 }
  0x55   :  { %484 = vmatpush.msrb.mxu1 %v466_v23 }
  0x57   :  { %485 = vmatpush.msrb.mxu1 %v465_v26  ;;  %v260_v26 = vlaneseq }
  0x59   :  { %486 = vmatpush.msrb.mxu1 %v464_v28  ;;  %v261_v27 = vand.u32 127, %v260_v26 }
  0x5b   :  { %487 = vmatpush.msrb.mxu1 %v463_v30  ;;  %vm306_vm1 = vcmp.eq.s32.totalorder %v261_v27, 0  ;;  %vm355_vm2 = vcmp.eq.s32.totalorder %v261_v27, 1  ;;  %vm404_vm3 = vcmp.eq.s32.totalorder %v261_v27, 2  ;;  %vm453_vm4 = vcmp.eq.s32.totalorder %v261_v27, 3 }
  0x5c   :  { %vm502_vm5 = vcmp.eq.s32.totalorder %v261_v27, 4 }
  0x5d   :  { %488 = vmatpush.msrb.mxu1 %v462_v32 }
  0x5f   :  { %489 = vmatpush.msrb.mxu1 %v461_v34 }
  0x61   :  { %490 = vmatpush.msrb.mxu1 %v460_v37 }
  0x63   :  { %491 = vmatpush.msrb.mxu1 %v459_v39 }
  0x65   :  { %492 = vmatpush.msrb.mxu1 %v458_v42 }
  0x67   :  { %493 = vmatpush.msrb.mxu1 %v457_v44 }
  0xa5   :  { %v171_v43 = vpop.f32.mrf.mxu0 }
  0xa6   :  { %v172_v45 = vadd.f32 %v171_v43, %v140_v40 }
  0xa8   :  { %v254_v46 = vmax.f32 %v172_v45, 0.0 }
  0xaa   :  { %298 = vmatmul.f32.vlgmr.msra.gmra.mxu1 %v254_v46  ;;  %v191_v48 = vpop.f32.mrf.mxu2 }
  0xab   :  { %v192_v49 = vadd.f32 %v191_v48, %v141_v47 }
  0xad   :  { %v255_v51 = vmax.f32 %v192_v49, 0.0 }
  0xaf   :  { %347 = vmatmul.f32.vlgmr.msra.gmra.mxu2 %v255_v51  ;;  %v251_v54 = vpop.f32.mrf.mxu0  ;;  %v231_v55 = vpop.f32.mrf.mxu3 }
  0xb0   :  { %v252_v56 = vadd.f32 %v251_v54, %v144_v50  ;;  %v232_v57 = vadd.f32 %v231_v55, %v143_v52 }
  0xb2   :  { %v258_v59 = vmax.f32 %v252_v56, 0.0  ;;  %v257_v61 = vmax.f32 %v232_v57, 0.0 }
  0xb4   :  { %v211_v58 = vpop.f32.mrf.mxu2  ;;  %494 = vmatmul.f32.vlgmr.msrb.gmra.mxu1 %v258_v59  ;;  %445 = vmatmul.f32.vlgmr.msra.gmra.mxu0 %v257_v61 }
  0xb5   :  { %v212_v60 = vadd.f32 %v211_v58, %v142_v53 }
  0xb7   :  { %v256_v62 = vmax.f32 %v212_v60, 0.0 }
  0xb9   :  { %396 = vmatmul.f32.vlgmr.msrb.gmra.mxu3 %v256_v62 }
 0x127   :  { %v299_v0 = vpop.f32.mrf.mxu1 }
 0x128   :  { %v300_v2 = vadd.f32 %v556_v63, %v299_v0 }
 0x12a   :  { %v302_v3 = vsub.f32 %v259_v1, %v300_v2 }
 0x12c   :  { %v303_v4 = vmul.f32 %v302_v3, %v302_v3 }
 0x12e   :  { %304 = vadd.xlane.f32.xlu0 %v303_v4 }
 0x131   :  { %v495_v7 = vpop.f32.mrf.mxu1  ;;  %v446_v18 = vpop.f32.mrf.mxu0 }
 0x132   :  { %v348_v8 = vpop.f32.mrf.mxu2  ;;  %v496_v9 = vadd.f32 %v560_v5, %v495_v7  ;;  %v447_v21 = vadd.f32 %v559_v16, %v446_v18 }
 0x133   :  { %v349_v10 = vadd.f32 %v557_v6, %v348_v8 }
 0x134   :  { %v498_v11 = vsub.f32 %v259_v1, %v496_v9  ;;  %v449_v23 = vsub.f32 %v259_v1, %v447_v21 }
 0x135   :  { %v351_v12 = vsub.f32 %v259_v1, %v349_v10 }
 0x136   :  { %v499_v13 = vmul.f32 %v498_v11, %v498_v11  ;;  %v450_v24 = vmul.f32 %v449_v23, %v449_v23 }
 0x137   :  { %v352_v14 = vmul.f32 %v351_v12, %v351_v12 }
 0x138   :  { %500 = vadd.xlane.f32.xlu2 %v499_v13 }
 0x139   :  { %353 = vadd.xlane.f32.xlu0 %v352_v14 }
 0x13c   :  { %v397_v17 = vpop.f32.mrf.mxu3 }
 0x13d   :  { %v398_v19 = vadd.f32 %v558_v15, %v397_v17 }
 0x13f   :  { %v400_v20 = vsub.f32 %v259_v1, %v398_v19 }
 0x141   :  { %v401_v22 = vmul.f32 %v400_v20, %v400_v20 }
 0x143   :  { %402 = vadd.xlane.f32.xlu1 %v401_v22 }
 0x14b   :  { %451 = vadd.xlane.f32.xlu1 %v450_v24 }
 0x1a1   :  { %v305_v25 = vpop.xlane.xlu0 %304 }
 0x1a2   :  { %v307_v30 = vsel %vm306_vm1, %v305_v25, 0.0 }
 0x1ab   :  { %v501_v34 = vpop.xlane.xlu2 %500 }
 0x1ac   :  { %v354_v28 = vpop.xlane.xlu0 %353  ;;  %v503_v38 = vsel %vm502_vm5, %v501_v34, 0.0 }
 0x1ad   :  { %v356_v31 = vsel %vm355_vm2, %v354_v28, 0.0 }
 0x1ae   :  { %v357_v33 = vadd.f32 %v356_v31, %v307_v30 }
 0x1b6   :  { %v403_v29 = vpop.xlane.xlu1 %402 }
 0x1b7   :  { %v405_v32 = vsel %vm404_vm3, %v403_v29, 0.0 }
 0x1b8   :  { %v406_v35 = vadd.f32 %v405_v32, %v357_v33 }
 0x1be   :  { %v452_v36 = vpop.xlane.xlu1 %451 }
 0x1bf   :  { %v454_v37 = vsel %vm453_vm4, %v452_v36, 0.0 }
 0x1c0   :  { %v455_v39 = vadd.f32 %v454_v37, %v406_v35 }
 0x1c2   :  { %v504_v40 = vadd.f32 %v503_v38, %v455_v39 }
 0x1c4   :  { %561 = vrsqrt.f32 %v504_v40  ;;  %vm512_vm6 = vcmp.eq.f32.partialorder %v504_v40, inf  ;;  %v515_v48 = vand.u32 2147483648, %v504_v40  ;;  %vm514_vm7 = vcmp.eq.f32.partialorder %v504_v40, 0.0 }
 0x1ca   :  { %v562_v41 = vpop.eup %561 }
 0x1cb   :  { %v506_v42 = vmul.f32 %v562_v41, %v504_v40 }
 0x1cd   :  { %v507_v43 = vmul.f32 %v562_v41, %v506_v42 }
 0x1cf   :  { %v508_v44 = vmul.f32 0.5, %v507_v43 }
 0x1d1   :  { %v509_v45 = vsub.f32 1.5, %v508_v44 }
 0x1d3   :  { %v510_v46 = vmul.f32 %v562_v41, %v509_v45 }
 0x1d5   :  { %v511_v47 = vmul.f32 %v510_v46, %v504_v40 }
 0x1d7   :  { %v513_v49 = vsel %vm512_vm6, %v504_v40, %v511_v47 }
 0x1d8   :  { %v516_v50 = vsel %vm514_vm7, %v515_v48, %v513_v49 }
 0x1d9   :  { %517 = vst [vmem:[#allocation13] sm:$0xff] %v516_v50 }
 0x1da   :  { %528 = dma.vmem_to_hbm [thread:$0]  %s524_s5, 128, %s526_s7, [#allocation4]  }
 0x1db   :  { %739 = dma.done.wait [#allocation4], 128  }
 0x1dc   :  { %740 = vsyncadd [#allocation4], 4294967168 }
 0x1dd   :  { %533 = vsyncpa [#allocation3], 1 }
 0x1de   :  { %534 = vsyncpa [#allocation6], 1 }
 0x1df   :  { %535 = vsyncpa [#allocation9], 1 }
 0x1e0   :  { %536 = vsyncpa [#allocation12], 1 }
 0x1e1   :  { %537 = vsyncpa [#allocation4], 1 }

</bundles_post_ra>
